<compile_context>
chip_gen: v5e
topology: v5e:2x2
jax: 0.10.0
libtpu: 0.0.40
codegen_flags: <defaults>
</compile_context>

<pallas_src>
import functools

import jax
import jax.numpy as jnp
from jax import lax
from jax.experimental import pallas as pl
from jax.experimental.pallas import tpu as pltpu

DROPOUT = 0.5
EMBEDDING_DIM = 128
FILTER_NUM = 100
FILTER_SIZES = (3, 4, 5)
LABEL_NUM = 14
VOCAB_SIZE = 50002

FP = 128                        # FILTER_NUM padded to a full lane tile
LP = 128                        # LABEL_NUM padded to a full lane tile (lane-dense output)
NUM_GROUPS = len(FILTER_SIZES)  # 3 filter-size groups
MAX_FS = max(FILTER_SIZES)      # 5 fused conv taps
SLACK = 8                       # zero rows appended per batch block so shifted taps stay in-bounds


def textcnn_kernel(emb_ref, wcat_ref, bcat_ref, wl_ref, bl_ref, out_ref, feat_ref, *,
                   cb, n_chunks, s_pad, seq_len):
    """One batch tile per grid step: K-fused conv matmul + chunked max-pool + bias/ReLU + linear."""
    cm = cb * s_pad                              # flattened embedding rows per chunk
    block_b = cb * n_chunks

    def chunk_body(c):
        base = c * cm
        if not isinstance(base, int):            # dynamic chunk index (fori_loop fallback path)
            base = pl.multiple_of(base, 8)
        # bf16 block slice (+SLACK rows so all 5 shifted tap windows stay in-bounds).
        e = emb_ref[pl.ds(base, cm + SLACK), :]                            # (cm+8, E) bf16
        # Lane-concatenate the 5 shifted tap windows -> K = 5*E = 640 for ONE MXU matmul
        # (tap accumulation happens inside the MRF/MRB instead of a VMEM f32 accumulator).
        a = jnp.concatenate([e[i:i + cm, :] for i in range(MAX_FS)], axis=-1)   # (cm, 5*E)
        conv = jnp.dot(a, wcat_ref[...], preferred_element_type=jnp.float32)    # (cm, 3*FP)
        conv = conv.reshape(cb, s_pad, NUM_GROUPS * FP)
        # Global max-pool over the valid conv positions of each filter-size group.
        pooled = [jnp.max(conv[:, :seq_len - fs + 1, g * FP:(g + 1) * FP], axis=1)
                  for g, fs in enumerate(FILTER_SIZES)]
        feat_ref[c, :, :] = jnp.concatenate(pooled, axis=-1)                    # (cb, 3*FP)

    if n_chunks <= 8:                            # common case: fully static unrolled chunks
        for c in range(n_chunks):
            chunk_body(c)
    else:                                        # rare (user-forced huge block): bound code size
        def loop_body(c, carry):
            chunk_body(c)
            return carry
        lax.fori_loop(0, n_chunks, loop_body, 0)

    # Bias + ReLU after the max-pool (per-filter bias + monotone ReLU -> identical result).
    feat = feat_ref[...].reshape(block_b, NUM_GROUPS * FP) + bcat_ref[...]
    feat = jnp.maximum(feat, 0.0)
    # TODO(synk): nn.Dropout treated as eval-mode identity (no in-kernel RNG masking).
    y = jnp.dot(feat.astype(jnp.bfloat16), wl_ref[...], preferred_element_type=jnp.float32)
    out_ref[...] = y + bl_ref[...]               # lane-dense (block_b, 128) f32 store


def pack_params(params):
    """One-time conversion of PyTorch-layout params to the fused / zero-padded / bf16 layout."""
    # Fused conv weight bank: rows [i*E, (i+1)*E) hold tap i; cols [g*FP, g*FP+F) hold group g.
    wcat = jnp.zeros((MAX_FS * EMBEDDING_DIM, NUM_GROUPS * FP), jnp.float32)
    bcat = jnp.zeros((1, NUM_GROUPS * FP), jnp.float32)
    for g, ((w, b), fs) in enumerate(zip(params["convs"], FILTER_SIZES)):
        for i in range(fs):                      # w: (F, fs, E) -> tap i block is (E, F)
            wcat = wcat.at[i * EMBEDDING_DIM:(i + 1) * EMBEDDING_DIM,
                           g * FP:g * FP + FILTER_NUM].set(w[:, i, :].T)
        bcat = bcat.at[0, g * FP:g * FP + FILTER_NUM].set(b)

    wl, bl = params["linear"]                    # (14, 300), (14,)
    wlp = jnp.zeros((NUM_GROUPS * FP, LP), jnp.float32)
    for g in range(NUM_GROUPS):
        wlp = wlp.at[g * FP:g * FP + FILTER_NUM, :LABEL_NUM].set(
            wl[:, g * FILTER_NUM:(g + 1) * FILTER_NUM].T)
    blp = jnp.zeros((1, LP), jnp.float32).at[0, :LABEL_NUM].set(bl)

    return {
        "embedding_bf16": params["embedding"].astype(jnp.bfloat16),  # cast ONCE at model load
        "wcat": wcat.astype(jnp.bfloat16),
        "bcat": bcat,
        "wl": wlp.astype(jnp.bfloat16),
        "bl": blp,
    }


def textcnn_forward(tokens, packed, *, block_b=None):
    batch, seq_len = tokens.shape
    assert seq_len >= MAX_FS, "sequence must be at least as long as the largest filter"

    s_pad = -(-seq_len // 8) * 8                 # sublane-aligned sequence length
    b8 = -(-batch // 8) * 8                      # batch padded to a multiple of 8

    if block_b is None:
        # Cap the flattened working set at ~2048 rows (sized for v7x's 64 MiB VMEM),
        # keep block_b a multiple of 8 (lane/sublane-dense out spec), and split a
        # single-block batch in two so a v7x megacore keeps both TensorCores busy.
        cap = max(8, (2048 // s_pad) // 8 * 8)
        block_b = min(cap, b8)
        if block_b == b8 and b8 >= 16:
            block_b = -(-(b8 // 2) // 8) * 8
    else:
        block_b = max(8, -(-block_b // 8) * 8)   # guard: multiple of 8

    n_blocks = -(-batch // block_b)
    b_pad = n_blocks * block_b

    # Chunking of the conv/pool inside the kernel: whole batch rows, ~1024 flattened rows
    # per chunk (live f32 conv slab <= ~1.5 MB), chunk count must divide block_b.
    cb = max(1, min(block_b, 1024 // s_pad))
    while block_b % cb:
        cb -= 1
    n_chunks = block_b // cb
    cm = cb * s_pad
    rows = block_b * s_pad + SLACK               # flattened rows per block (incl. tap slack)

    # Embedding gather directly from the bf16 table (cast once in pack_params).
    emb = jnp.take(packed["embedding_bf16"], tokens, axis=0)              # (B, S, E) bf16
    emb = jnp.pad(emb, ((0, b_pad - batch), (0, s_pad - seq_len), (0, 0)))
    emb = emb.reshape(n_blocks, block_b * s_pad, EMBEDDING_DIM)
    emb = jnp.pad(emb, ((0, 0), (0, SLACK), (0, 0)))                      # per-block tap slack
    emb_flat = emb.reshape(n_blocks * rows, EMBEDDING_DIM)

    # VMEM limit sized to ~3x the real working set, clamped well under v7x's 64 MiB.
    work = (2 * rows * EMBEDDING_DIM * 2                       # double-buffered bf16 emb block
            + cm * MAX_FS * EMBEDDING_DIM * 2                  # K-concat bf16 activation
            + cm * NUM_GROUPS * FP * 4                         # live f32 conv chunk
            + block_b * NUM_GROUPS * FP * 4                    # pooled-feature scratch
            + 4 * (MAX_FS * EMBEDDING_DIM * NUM_GROUPS * FP + NUM_GROUPS * FP * LP)  # weights x2
            + 2 * block_b * LP * 4)                            # double-buffered f32 out
    vmem_limit = int(min(48 * 1024 * 1024, max(8 * 1024 * 1024, 3 * work)))

    kernel = functools.partial(textcnn_kernel, cb=cb, n_chunks=n_chunks,
                               s_pad=s_pad, seq_len=seq_len)

    out = pl.pallas_call(
        kernel,
        out_shape=jax.ShapeDtypeStruct((b_pad, LP), jnp.float32),
        grid_spec=pltpu.PrefetchScalarGridSpec(
            num_scalar_prefetch=0,
            grid=(n_blocks,),
            in_specs=[
                pl.BlockSpec((rows, EMBEDDING_DIM), lambda b: (b, 0)),
                pl.BlockSpec((MAX_FS * EMBEDDING_DIM, NUM_GROUPS * FP), lambda b: (0, 0)),
                pl.BlockSpec((1, NUM_GROUPS * FP), lambda b: (0, 0)),
                pl.BlockSpec((NUM_GROUPS * FP, LP), lambda b: (0, 0)),
                pl.BlockSpec((1, LP), lambda b: (0, 0)),
            ],
            out_specs=pl.BlockSpec((block_b, LP), lambda b: (b, 0)),
            scratch_shapes=[pltpu.VMEM((n_chunks, cb, NUM_GROUPS * FP), jnp.float32)]),
        compiler_params=pltpu.CompilerParams(
            dimension_semantics=("parallel",),
            vmem_limit_bytes=vmem_limit),
    )(emb_flat, packed["wcat"], packed["bcat"], packed["wl"], packed["bl"])

    return out[:batch, :LABEL_NUM]               # trim batch / label padding


def init_params(key):
    keys = jax.random.split(key, 9)
    emb_table = 0.1 * jax.random.normal(keys[0], (VOCAB_SIZE, EMBEDDING_DIM), jnp.float32)
    convs = []
    for idx, fs in enumerate(FILTER_SIZES):
        # PyTorch conv weight is (F, 1, fs, E); stored here as (F, fs, E) plus bias (F,).
        w = 0.05 * jax.random.normal(keys[1 + idx], (FILTER_NUM, fs, EMBEDDING_DIM), jnp.float32)
        b = 0.05 * jax.random.normal(keys[4 + idx], (FILTER_NUM,), jnp.float32)
        convs.append((w, b))
    wl = 0.05 * jax.random.normal(keys[7],
                                  (LABEL_NUM, NUM_GROUPS * FILTER_NUM), jnp.float32)
    bl = 0.05 * jax.random.normal(keys[8], (LABEL_NUM,), jnp.float32)
    return {"embedding": emb_table, "convs": convs, "linear": (wl, bl)}


def reference_forward(tokens, params):
    """Pure f32 JAX reference matching the PyTorch forward (dropout in eval mode)."""
    emb = jnp.take(params["embedding"], tokens, axis=0)        # (B, S, E)
    feats = []
    for w, b in params["convs"]:                               # w: (F, fs, E)
        fs = w.shape[1]
        l_out = emb.shape[1] - fs + 1
        conv = jnp.zeros((emb.shape[0], l_out, FILTER_NUM), jnp.float32)
        for i in range(fs):
            conv = conv + jnp.einsum("ble,fe->blf", emb[:, i:i + l_out, :], w[:, i, :])
        conv = jnp.maximum(conv + b[None, None, :], 0.0)
        feats.append(jnp.max(conv, axis=1))
    feat = jnp.concatenate(feats, axis=1)                      # (B, 300)
    wl, bl = params["linear"]
    return feat @ wl.T + bl[None, :]


if __name__ == "__main__":
    key = jax.random.PRNGKey(0)
    params = init_params(key)
    packed = pack_params(params)                               # one-time bf16 cast / fused layout

    batch, seq_len = 16, 16
    tokens = jax.random.randint(jax.random.fold_in(key, 123),
                                (batch, seq_len), 0, VOCAB_SIZE, dtype=jnp.int32)

    out = jax.block_until_ready(textcnn_forward(tokens, packed))   # default heuristic: 2 blocks of 8

    ref = reference_forward(tokens, params)
    assert out.shape == (batch, LABEL_NUM)
    # bf16 MXU inputs with f32 accumulation -> small rounding difference vs the f32 reference.
    assert jnp.allclose(out, ref, atol=2e-2, rtol=2e-2), float(jnp.max(jnp.abs(out - ref)))
    print("KERNEL_OK")
</pallas_src>

<mosaic_0001>
module attributes {stable_mosaic.version = 11 : i64} {
  func.func @textcnn_kernel(%arg0: i32, %arg1: memref<136x128xbf16, #tpu.memory_space<vmem>>, %arg2: memref<640x384xbf16, #tpu.memory_space<vmem>>, %arg3: memref<1x384xf32, #tpu.memory_space<vmem>>, %arg4: memref<384x128xbf16, #tpu.memory_space<vmem>>, %arg5: memref<1x128xf32, #tpu.memory_space<vmem>>, %arg6: memref<8x128xf32, #tpu.memory_space<vmem>>, %arg7: memref<1x8x384xf32, #tpu.memory_space<vmem>>) attributes {dimension_semantics = [#tpu.dimension_semantics<parallel>], iteration_bounds = array<i64: 2>, scalar_prefetch = 0 : i64, scratch_operands = 1 : i64, tpu.core_type = #tpu.core_type<tc>, window_params = [{transform_indices = @transform_0, window_bounds = array<i64: 136, 128>}, {pipeline_mode = #tpu.pipeline_mode<synchronous>, transform_indices = @transform_1, window_bounds = array<i64: 640, 384>}, {pipeline_mode = #tpu.pipeline_mode<synchronous>, transform_indices = @transform_2, window_bounds = array<i64: 1, 384>}, {pipeline_mode = #tpu.pipeline_mode<synchronous>, transform_indices = @transform_3, window_bounds = array<i64: 384, 128>}, {pipeline_mode = #tpu.pipeline_mode<synchronous>, transform_indices = @transform_4, window_bounds = array<i64: 1, 128>}, {transform_indices = @transform_5, window_bounds = array<i64: 8, 128>}]} {
    %c0 = arith.constant 0 : index
    %c0_0 = arith.constant 0 : index
    %0 = vector.load %arg1[%c0, %c0_0] : memref<136x128xbf16, #tpu.memory_space<vmem>>, vector<136x128xbf16>
    %1 = vector.extract_strided_slice %0 {offsets = [0, 0], sizes = [128, 128], strides = [1, 1]} : vector<136x128xbf16> to vector<128x128xbf16>
    %2 = vector.extract_strided_slice %0 {offsets = [1, 0], sizes = [128, 128], strides = [1, 1]} : vector<136x128xbf16> to vector<128x128xbf16>
    %3 = vector.extract_strided_slice %0 {offsets = [2, 0], sizes = [128, 128], strides = [1, 1]} : vector<136x128xbf16> to vector<128x128xbf16>
    %4 = vector.extract_strided_slice %0 {offsets = [3, 0], sizes = [128, 128], strides = [1, 1]} : vector<136x128xbf16> to vector<128x128xbf16>
    %5 = vector.extract_strided_slice %0 {offsets = [4, 0], sizes = [128, 128], strides = [1, 1]} : vector<136x128xbf16> to vector<128x128xbf16>
    %6 = tpu.concatenate %1, %2, %3, %4, %5 in 1 : vector<128x128xbf16>, vector<128x128xbf16>, vector<128x128xbf16>, vector<128x128xbf16>, vector<128x128xbf16> -> vector<128x640xbf16>
    %c0_1 = arith.constant 0 : index
    %c0_2 = arith.constant 0 : index
    %7 = vector.load %arg2[%c0_1, %c0_2] : memref<640x384xbf16, #tpu.memory_space<vmem>>, vector<640x384xbf16>
    %cst = arith.constant dense<0.000000e+00> : vector<128x384xf32>
    %8 = tpu.matmul %6, %7, %cst {dimension_numbers = #tpu.dot_dimension_numbers<[1], [0], [0], [1], [0, 0, 1, 1], [], []>} : vector<128x640xbf16>, vector<640x384xbf16>, vector<128x384xf32> -> vector<128x384xf32>
    %9 = vector.shape_cast %8 : vector<128x384xf32> to vector<8x16x384xf32>
    %10 = vector.extract_strided_slice %9 {offsets = [0, 0, 0], sizes = [8, 14, 128], strides = [1, 1, 1]} : vector<8x16x384xf32> to vector<8x14x128xf32>
    %cst_3 = arith.constant dense<0xFF800000> : vector<8x128xf32>
    %11 = vector.multi_reduction <maximumf>, %10, %cst_3 [1] : vector<8x14x128xf32> to vector<8x128xf32>
    %12 = vector.extract_strided_slice %9 {offsets = [0, 0, 128], sizes = [8, 13, 128], strides = [1, 1, 1]} : vector<8x16x384xf32> to vector<8x13x128xf32>
    %cst_4 = arith.constant dense<0xFF800000> : vector<8x128xf32>
    %13 = vector.multi_reduction <maximumf>, %12, %cst_4 [1] : vector<8x13x128xf32> to vector<8x128xf32>
    %14 = vector.extract_strided_slice %9 {offsets = [0, 0, 256], sizes = [8, 12, 128], strides = [1, 1, 1]} : vector<8x16x384xf32> to vector<8x12x128xf32>
    %cst_5 = arith.constant dense<0xFF800000> : vector<8x128xf32>
    %15 = vector.multi_reduction <maximumf>, %14, %cst_5 [1] : vector<8x12x128xf32> to vector<8x128xf32>
    %16 = tpu.concatenate %11, %13, %15 in 1 : vector<8x128xf32>, vector<8x128xf32>, vector<8x128xf32> -> vector<8x384xf32>
    %c0_6 = arith.constant 0 : index
    %c0_7 = arith.constant 0 : index
    %c0_8 = arith.constant 0 : index
    %17 = vector.load %arg7[%c0_6, %c0_7, %c0_8] : memref<1x8x384xf32, #tpu.memory_space<vmem>>, vector<1x8x384xf32>
    %18 = vector.shape_cast %17 : vector<1x8x384xf32> to vector<8x384xf32>
    %19 = vector.shape_cast %16 : vector<8x384xf32> to vector<1x8x384xf32>
    tpu.vector_store %arg7[%c0_6, %c0_7, %c0_8], %19 {strides = array<i32>} : memref<1x8x384xf32, #tpu.memory_space<vmem>>, vector<1x8x384xf32>,
    %c0_9 = arith.constant 0 : index
    %c0_10 = arith.constant 0 : index
    %c0_11 = arith.constant 0 : index
    %20 = vector.load %arg7[%c0_9, %c0_10, %c0_11] : memref<1x8x384xf32, #tpu.memory_space<vmem>>, vector<1x8x384xf32>
    %21 = vector.shape_cast %20 : vector<1x8x384xf32> to vector<8x384xf32>
    %c0_12 = arith.constant 0 : index
    %c0_13 = arith.constant 0 : index
    %22 = vector.load %arg3[%c0_12, %c0_13] : memref<1x384xf32, #tpu.memory_space<vmem>>, vector<1x384xf32>
    %23 = vector.broadcast %22 : vector<1x384xf32> to vector<8x384xf32>
    %24 = arith.addf %21, %23 : vector<8x384xf32>
    %cst_14 = arith.constant 0.000000e+00 : f32
    %25 = vector.broadcast %cst_14 : f32 to vector<8x384xf32>
    %26 = arith.maximumf %24, %25 : vector<8x384xf32>
    %27 = arith.truncf %26 : vector<8x384xf32> to vector<8x384xbf16>
    %c0_15 = arith.constant 0 : index
    %c0_16 = arith.constant 0 : index
    %28 = vector.load %arg4[%c0_15, %c0_16] : memref<384x128xbf16, #tpu.memory_space<vmem>>, vector<384x128xbf16>
    %cst_17 = arith.constant dense<0.000000e+00> : vector<8x128xf32>
    %29 = tpu.matmul %27, %28, %cst_17 {dimension_numbers = #tpu.dot_dimension_numbers<[1], [0], [0], [1], [0, 0, 1, 1], [], []>} : vector<8x384xbf16>, vector<384x128xbf16>, vector<8x128xf32> -> vector<8x128xf32>
    %c0_18 = arith.constant 0 : index
    %c0_19 = arith.constant 0 : index
    %30 = vector.load %arg5[%c0_18, %c0_19] : memref<1x128xf32, #tpu.memory_space<vmem>>, vector<1x128xf32>
    %31 = vector.broadcast %30 : vector<1x128xf32> to vector<8x128xf32>
    %32 = arith.addf %29, %31 : vector<8x128xf32>
    %c0_20 = arith.constant 0 : index
    %c0_21 = arith.constant 0 : index
    %33 = vector.load %arg6[%c0_20, %c0_21] : memref<8x128xf32, #tpu.memory_space<vmem>>, vector<8x128xf32>
    tpu.vector_store %arg6[%c0_20, %c0_21], %32 {strides = array<i32>} : memref<8x128xf32, #tpu.memory_space<vmem>>, vector<8x128xf32>,
    return
  }
  func.func @transform_0(%arg0: i32) -> (i32, i32) {
    %c0_i32 = arith.constant 0 : i32
    %c0_i32_0 = arith.constant 0 : i32
    return %arg0, %c0_i32 : i32, i32
  }
  func.func @transform_1(%arg0: i32) -> (i32, i32) {
    %c0_i32 = arith.constant 0 : i32
    %c0_i32_0 = arith.constant 0 : i32
    %c0_i32_1 = arith.constant 0 : i32
    return %c0_i32, %c0_i32_0 : i32, i32
  }
  func.func @transform_2(%arg0: i32) -> (i32, i32) {
    %c0_i32 = arith.constant 0 : i32
    %c0_i32_0 = arith.constant 0 : i32
    %c0_i32_1 = arith.constant 0 : i32
    return %c0_i32, %c0_i32_0 : i32, i32
  }
  func.func @transform_3(%arg0: i32) -> (i32, i32) {
    %c0_i32 = arith.constant 0 : i32
    %c0_i32_0 = arith.constant 0 : i32
    %c0_i32_1 = arith.constant 0 : i32
    return %c0_i32, %c0_i32_0 : i32, i32
  }
  func.func @transform_4(%arg0: i32) -> (i32, i32) {
    %c0_i32 = arith.constant 0 : i32
    %c0_i32_0 = arith.constant 0 : i32
    %c0_i32_1 = arith.constant 0 : i32
    return %c0_i32, %c0_i32_0 : i32, i32
  }
  func.func @transform_5(%arg0: i32) -> (i32, i32) {
    %c0_i32 = arith.constant 0 : i32
    %c0_i32_0 = arith.constant 0 : i32
    return %arg0, %c0_i32 : i32, i32
  }
}

</mosaic_0001>

<bundles_post_ra>
// kernel: tpu_custom_call.1
= control target key start
LH: loop header
LB: loop body
LE: loop exit
PB: predicated region body
PF: predicated region fallthrough
CT: control target
= control target key end

     0   :  { %s4458_s0 = inlined_call_operand.hbm [shape: bf16[272,128], index: 0, kind: input, shape index: {}]   ;;  %s4459_s1 = inlined_call_operand.hbm [shape: bf16[640,384], index: 1, kind: input, shape index: {}]   ;;  %s4460_s2 = inlined_call_operand.hbm [shape: f32[1,384], index: 2, kind: input, shape index: {}]   ;;  %s4461_s3 = inlined_call_operand.hbm [shape: bf16[384,128], index: 3, kind: input, shape index: {}]   ;;  %s4462_s4 = inlined_call_operand.vmem [shape: f32[1,128], index: 4, kind: input, shape index: {}]   ;;  %s4463_s5 = inlined_call_operand.hbm [shape: f32[16,128], index: 5, kind: output, shape index: {}]  }
   0x1   :  { %4471 = sst [smem:[#allocation21_spill]] %s4459_s1 }
   0x2   :  { %10 = vsyncpa [#allocation4], 0 }
   0x3   :  { %12 = vsyncpa [#allocation4 + $0x1], 0 }
   0x4   :  { %13 = vsyncpa [#allocation7], 0 }
   0x5   :  { %14 = vsyncpa [#allocation10], 0 }
   0x6   :  { %15 = vsyncpa [#allocation5], 0 }
   0x7   :  { %17 = vsyncpa [#allocation5 + $0x1], 0  ;;  %s3798_s18 = smov 0   ;;  %s3800_s19 = smov 0  }
   0x8   :  { %s3802_s20 = smov 0   ;;  %s3804_s21 = smov 0  }
   0x9 LB: > { %s3819_s22 = sadd.s32 4294967295, %s3759_s21   ;;  %s2696_s23 = sadd.s32 4294967294, %s3759_s21   ;;  %s3759_s21 = sphi %s3804_s21, %s4495_s21   ;;  %s3755_s20 = sphi %s3802_s20, %s4494_s20   ;;  %s3751_s19 = sphi %s3800_s19, %s4493_s19   ;;  %s3747_s18 = sphi %s3798_s18, %s4492_s18  }
   0xa   : > { %p43_p0 = scmp.ne.s32.totalorder %s3751_s19, %s3747_s18  ;;  %p44_p1 = scmp.eq.s32.totalorder %s3819_s22, 0 }
   0xb   : > { %p151_p2 = scmp.eq.s32.totalorder %s3819_s22, 1  ;;  %p157_p3 = scmp.eq.s32.totalorder %s2696_s23, 1 }
   0xc   : > { %p3828_p4 = por %p44_p1, %p43_p0  ;;  %p2697_p5 = scmp.ge.s32.totalorder %s3759_s21, 1 }
   0xd   : > { %p3833_p6 = por %p157_p3, %p43_p0  ;;  %p164_p7 = scmp.lt.s32.totalorder %s3759_s21, 3 }
   0xe   : > { %s4474_s1 = sld [smem:[#allocation21_spill]]  ;;  %s3761_s30 = smov [#allocation6]  }
   0xf   : > { %p3841_p8 = pnand %p2697_p5, %p164_p7  ;;  %s177_s6 = sshll.u32 %s3761_s30, 4  ;;  %s178_s6 = int_to_ptr.vmem [resolvable:$true] %s177_s6 }
  0x10   : > { %s190_s10 = sshll.u32 %s4460_s2, 4  ;;  %s3762_s11 = smov 192   ;;  %s191_s10 = int_to_ptr.hbm [resolvable:$true] %s190_s10 }
  0x11   : > { %p3491_p9 = pneg %p3841_p8  ;;  %s3763_s12 = smov 12  }
  0x12   : > { %s3764_s13 = smov [#allocation8]   ;;  %s201_s17 = sshll.u32 %s4461_s3, 4  ;;  %s202_s17 = int_to_ptr.hbm [resolvable:$true] %s201_s17 }
  0x13   : > { %p3849_p10 = pnand %p3491_p9, %p44_p1  ;;  %s192_s14 = sshll.u32 %s3764_s13, 4  ;;  %s193_s14 = int_to_ptr.vmem [resolvable:$true] %s192_s14 }
  0x14   : > { %s175_s28 = sshll.u32 %s4474_s1, 4  ;;  %s3765_s23 = smov [#allocation9]   ;;  %s176_s28 = int_to_ptr.hbm [resolvable:$true] %s175_s28 }
  0x15   : > { %3494 = dma.hbm_to_vmem [thread:$0]  (!%p3849_p10), %s176_s28, 15360, %s178_s6, [#allocation7], %s3762_s11, %s3762_s11, %s3763_s12  }
  0x16   : > { %3497 = dma.hbm_to_vmem [thread:$0]  (!%p3849_p10), %s191_s10, 48, %s193_s14, [#allocation7]  }
  0x17   : > { %s203_s26 = sshll.u32 %s3765_s23, 4  ;;  %s4464_s27 = smov 64   ;;  %s204_s26 = int_to_ptr.vmem [resolvable:$true] %s203_s26 }
  0x18   : > { %s4465_s28 = smov 4   ;;  %s3870_s30 = sadd.s32 1, %s3759_s21  }
  0x19   : > { %3500 = dma.hbm_to_vmem [thread:$0]  (!%p3849_p10), %s202_s17, 3072, %s204_s26, [#allocation10], %s4464_s27, %s4464_s27, %s4465_s28  }
  0x1a   : > { %s27_s6 = ssub.s32 %s3759_s21, %s3870_s30  ;;  %s30_s8 = sadd.s32 1, %s3755_s20 }
  0x1b   : > { %p28_p12 = scmp.eq.s32.totalorder %s27_s6, 0  ;;  %p37_p13 = scmp.ne.s32.totalorder %s3755_s20, %s3751_s19 }
  0x1c   : > { %p38_p0 = scmp.eq.s32.totalorder %s3759_s21, 0  ;;  %p3512_p3 = scmp.lt.s32.totalorder %s3759_s21, 2 }
  0x1d   : > { %s3880_s9 = scalar_select %p28_p12, %s3755_s20, %s30_s8  }
  0x1e   : > { %p39_p5 = por %p38_p0, %p37_p13  ;;  %p3884_p7 = por %p151_p2, %p37_p13 }
  0x1f   : > { %s220_s7 = sand.u32 1, %s3755_s20   ;;  %s3320_s11 = smul.u32 68, %s3759_s21 }
  0x20   : > { %s3473_s12 = smul.u32 68, %s220_s7  ;;  %p3893_p9 = pnand %p3512_p3, %p39_p5 }
  0x21   : > { %s229_s15 = scalar_lea.hbm %s4458_s0, %s3320_s11  ;;  %s221_s6 = scalar_lea.sflag [#allocation4], %s220_s7 }
  0x22   : > { %s230_s17 = sshll.u32 %s229_s15, 4  ;;  %s224_s23 = scalar_lea.vmem [#allocation3], %s3473_s12  ;;  %s231_s17 = int_to_ptr.hbm [resolvable:$true] %s230_s17 }
  0x23   : > { %s232_s26 = sshll.u32 %s224_s23, 4  ;;  %s3655_s8 = sshra.s32 %s231_s17, 4  ;;  %s233_s26 = int_to_ptr.vmem [resolvable:$true] %s232_s26  ;;  %s3656_s8 = int_to_ptr.hbm [resolvable:$true] %s3655_s8 }
  0x24   : > { %s3657_s27 = scalar_lea.hbm %s3656_s8, 68  ;;  %p3659_p10 = pneg %p3893_p9 }
  0x25   : > { %p3658_p2 = scmp.ne.s32.totalorder %s3656_s8, %s3657_s27  ;;  %s3662_s14 = scalar_lea.hbm %s4458_s0, 136 }
  0x26   : > { %p3663_p0 = scmp.lt.s32.totalorder %s3656_s8, %s4458_s0  ;;  %p3664_p3 = scmp.lt.s32.totalorder %s3662_s14, %s3657_s27 }
  0x27   : > { %p3660_p12 = pnand %p3659_p10, %p3658_p2 }
  0x28   : > { %p3665_p5 = por %p3664_p3, %p3663_p0 }
  0x29   : > { %p3661_p13 = pneg %p3660_p12 }
  0x2b   : > { %p3666_p11 = pnand %p3665_p5, %p3661_p13 }
  0x2d   : > { %3669 = shalt.err (!%p3666_p11)
}
  0x2e   : > { %s4479_s7 = smov 4   ;;  %s4480_s12 = smov 64  }
  0x2f   : > { %3504 = dma.hbm_to_vmem [thread:$0]  (!%p3893_p9), %s231_s17, 1088, %s233_s26, %s221_s6, %s4480_s12, %s4480_s12, %s4479_s7  }
  0x30   : > { %244 = sbr.rel (%p3841_p8) target bundleno = 898 (0x382), region = 40 }
  0x35   : > { %s3913_s15 = sand.u32 1, %s3751_s19  }
  0x36   : > { %s3474_s1 = smul.u32 68, %s3913_s15  ;;  %s247_s27 = scalar_lea.sflag [#allocation4], %s3913_s15 }
  0x38   : > { %s3917_s28 = scalar_lea.vmem [#allocation3], %s3474_s1 }
  0x39   : > { %3730 = dma.done.wait (%p3828_p4), %s247_s27, 1088  }
  0x3a   : > { %3732 = vsyncadd (%p3828_p4), %s247_s27, 4294966208 }
  0x3b   : > { %3734 = dma.done.wait (%p44_p1), [#allocation7], 15408  }
  0x3c   : > { %3736 = vsyncadd (%p44_p1), [#allocation7], 4294951888 }
  0x3d   : > { %3738 = dma.done.wait (%p44_p1), [#allocation10], 3072  }
  0x3e   : > { %3740 = vsyncadd (%p44_p1), [#allocation10], 4294964224  ;;  %v2826_v0 = vld [vmem:[#allocation6 + $0xa8] sm:$0xf]  ;;  %v3351_v1 = vld [vmem:[#allocation6 + $0xb0] sm:$0xf0] }
  0x3f   : > { %v2922_v2 = vld [vmem:[#allocation6 + $0x168] sm:$0xf]  ;;  %v2827_v3 = vor.u32 %v3351_v1, %v2826_v0  ;;  %v3375_v4 = vld [vmem:[#allocation6 + $0x170] sm:$0xf0]  ;;  %v2814_v11 = vld [vmem:[#allocation6 + $0x90] sm:$0xf] }
  0x40   : > { %v3018_v5 = vld [vmem:[#allocation6 + $0x228] sm:$0xf]  ;;  %v3399_v6 = vld [vmem:[#allocation6 + $0x230] sm:$0xf0]  ;;  %v2923_v7 = vor.u32 %v3375_v4, %v2922_v2  ;;  %v3348_v13 = vld [vmem:[#allocation6 + $0x98] sm:$0xf0] }
  0x41   : > { %v3019_v8 = vor.u32 %v3399_v6, %v3018_v5  ;;  %v3114_v9 = vld [vmem:[#allocation6 + $0x2e8] sm:$0xf]  ;;  %v3423_v10 = vld [vmem:[#allocation6 + $0x2f0] sm:$0xf0]  ;;  %1337 = vmatpush.bf16.msra.mxu0 %v2827_v3  ;;  %v2910_v14 = vld [vmem:[#allocation6 + $0x150] sm:$0xf]  ;;  %v2815_v16 = vor.u32 %v3348_v13, %v2814_v11 }
  0x42   : > { %v3115_v12 = vor.u32 %v3423_v10, %v3114_v9  ;;  %v3372_v15 = vld [vmem:[#allocation6 + $0x158] sm:$0xf0]  ;;  %1386 = vmatpush.bf16.msra.mxu1 %v2923_v7  ;;  %v3006_v18 = vld [vmem:[#allocation6 + $0x210] sm:$0xf]  ;;  %v2802_v23 = vld [vmem:[#allocation6 + $0x78] sm:$0xf] }
  0x43   : > { %1435 = vmatpush.bf16.msra.mxu2 %v3019_v8  ;;  %v2911_v17 = vor.u32 %v3372_v15, %v2910_v14  ;;  %v3396_v19 = vld [vmem:[#allocation6 + $0x218] sm:$0xf0]  ;;  %v3102_v20 = vld [vmem:[#allocation6 + $0x2d0] sm:$0xf]  ;;  %v3345_v24 = vld [vmem:[#allocation6 + $0x80] sm:$0xf0] }
  0x44   : > { %1484 = vmatpush.bf16.msra.mxu3 %v3115_v12  ;;  %v3007_v21 = vor.u32 %v3396_v19, %v3006_v18  ;;  %v3420_v22 = vld [vmem:[#allocation6 + $0x2d8] sm:$0xf0]  ;;  %v2898_v26 = vld [vmem:[#allocation6 + $0x138] sm:$0xf]  ;;  %v3369_v27 = vld [vmem:[#allocation6 + $0x140] sm:$0xf0]  ;;  %v2803_v29 = vor.u32 %v3345_v24, %v2802_v23 }
  0x45   : > { %v3103_v25 = vor.u32 %v3420_v22, %v3102_v20  ;;  %v2994_v28 = vld [vmem:[#allocation6 + $0x1f8] sm:$0xf]  ;;  %1338 = vmatpush.bf16.msra.mxu0 %v2815_v16  ;;  %v3393_v30 = vld [vmem:[#allocation6 + $0x200] sm:$0xf0]  ;;  %v2899_v33 = vor.u32 %v3369_v27, %v2898_v26  ;;  %v2790_v35 = vld [vmem:[#allocation6 + $0x60] sm:$0xf] }
  0x46   : > { %v3090_v31 = vld [vmem:[#allocation6 + $0x2b8] sm:$0xf]  ;;  %v3417_v32 = vld [vmem:[#allocation6 + $0x2c0] sm:$0xf0]  ;;  %1387 = vmatpush.bf16.msra.mxu1 %v2911_v17  ;;  %v2995_v34 = vor.u32 %v3393_v30, %v2994_v28  ;;  %v3342_v36 = vld [vmem:[#allocation6 + $0x68] sm:$0xf0] }
  0x47   : > { %1436 = vmatpush.bf16.msra.mxu2 %v3007_v21  ;;  %v2886_v37 = vld [vmem:[#allocation6 + $0x120] sm:$0xf]  ;;  %v3091_v38 = vor.u32 %v3417_v32, %v3090_v31  ;;  %v3366_v39 = vld [vmem:[#allocation6 + $0x128] sm:$0xf0]  ;;  %v2791_v44 = vor.u32 %v3342_v36, %v2790_v35  ;;  %v2778_v47 = vld [vmem:[#allocation6 + $0x48] sm:$0xf] }
  0x48   : > { %1485 = vmatpush.bf16.msra.mxu3 %v3103_v25  ;;  %v2982_v40 = vld [vmem:[#allocation6 + $0x1e0] sm:$0xf]  ;;  %v3390_v41 = vld [vmem:[#allocation6 + $0x1e8] sm:$0xf0]  ;;  %v2887_v45 = vor.u32 %v3366_v39, %v2886_v37  ;;  %v3339_v48 = vld [vmem:[#allocation6 + $0x50] sm:$0xf0] }
  0x49   : > { %v3078_v42 = vld [vmem:[#allocation6 + $0x2a0] sm:$0xf]  ;;  %v3414_v43 = vld [vmem:[#allocation6 + $0x2a8] sm:$0xf0]  ;;  %1339 = vmatpush.bf16.msra.mxu0 %v2803_v29  ;;  %v2983_v46 = vor.u32 %v3390_v41, %v2982_v40  ;;  %v2874_v49 = vld [vmem:[#allocation6 + $0x108] sm:$0xf]  ;;  %v2779_v56 = vor.u32 %v3339_v48, %v2778_v47 }
  0x4a   : > { %1388 = vmatpush.bf16.msra.mxu1 %v2899_v33  ;;  %v3079_v50 = vor.u32 %v3414_v43, %v3078_v42  ;;  %v3363_v51 = vld [vmem:[#allocation6 + $0x110] sm:$0xf0]  ;;  %v2970_v52 = vld [vmem:[#allocation6 + $0x1c8] sm:$0xf]  ;;  %v2766_v59 = vld [vmem:[#allocation6 + $0x30] sm:$0xf] }
  0x4b   : > { %1437 = vmatpush.bf16.msra.mxu2 %v2995_v34  ;;  %v3387_v53 = vld [vmem:[#allocation6 + $0x1d0] sm:$0xf0]  ;;  %v3066_v54 = vld [vmem:[#allocation6 + $0x288] sm:$0xf]  ;;  %v2875_v57 = vor.u32 %v3363_v51, %v2874_v49  ;;  %v3336_v60 = vld [vmem:[#allocation6 + $0x38] sm:$0xf0] }
  0x4c   : > { %1486 = vmatpush.bf16.msra.mxu3 %v3091_v38  ;;  %v3411_v55 = vld [vmem:[#allocation6 + $0x290] sm:$0xf0]  ;;  %v2971_v58 = vor.u32 %v3387_v53, %v2970_v52  ;;  %v2862_v61 = vld [vmem:[#allocation6 + $0xf0] sm:$0xf]  ;;  %v3360_v63 = vld [vmem:[#allocation6 + $0xf8] sm:$0xf0]  ;;  %v2767_v5 = vor.u32 %v3336_v60, %v2766_v59 }
  0x4d   : > { %1340 = vmatpush.bf16.msra.mxu0 %v2791_v44  ;;  %v3067_v62 = vor.u32 %v3411_v55, %v3066_v54  ;;  %v2958_v0 = vld [vmem:[#allocation6 + $0x1b0] sm:$0xf]  ;;  %v3384_v1 = vld [vmem:[#allocation6 + $0x1b8] sm:$0xf0]  ;;  %v2754_v4 = vld [vmem:[#allocation6 + $0x18] sm:$0xf]  ;;  %v2863_v9 = vor.u32 %v3360_v63, %v2862_v61 }
  0x4e   : > { %1389 = vmatpush.bf16.msra.mxu1 %v2887_v45  ;;  %v3054_v2 = vld [vmem:[#allocation6 + $0x270] sm:$0xf]  ;;  %v3408_v3 = vld [vmem:[#allocation6 + $0x278] sm:$0xf0]  ;;  %v3333_v6 = vld [vmem:[#allocation6 + $0x20] sm:$0xf0]  ;;  %v2959_v10 = vor.u32 %v3384_v1, %v2958_v0 }
  0x4f   : > { %1438 = vmatpush.bf16.msra.mxu2 %v2983_v46  ;;  %v2850_v7 = vld [vmem:[#allocation6 + $0xd8] sm:$0xf]  ;;  %v3357_v8 = vld [vmem:[#allocation6 + $0xe0] sm:$0xf0]  ;;  %v3055_v14 = vor.u32 %v3408_v3, %v3054_v2  ;;  %v2742_v18 = vld [vmem:[#allocation6] sm:$0xf]  ;;  %v2755_v23 = vor.u32 %v3333_v6, %v2754_v4 }
  0x50   : > { %1487 = vmatpush.bf16.msra.mxu3 %v3079_v50  ;;  %v2946_v11 = vld [vmem:[#allocation6 + $0x198] sm:$0xf]  ;;  %v3381_v12 = vld [vmem:[#allocation6 + $0x1a0] sm:$0xf0]  ;;  %v3330_v19 = vld [vmem:[#allocation6 + $0x8] sm:$0xf0]  ;;  %v2851_v28 = vor.u32 %v3357_v8, %v2850_v7 }
  0x51   : > { %1341 = vmatpush.bf16.msra.mxu0 %v2779_v56  ;;  %v3042_v13 = vld [vmem:[#allocation6 + $0x258] sm:$0xf]  ;;  %v3405_v15 = vld [vmem:[#allocation6 + $0x260] sm:$0xf0]  ;;  %v2838_v20 = vld [vmem:[#allocation6 + $0xc0] sm:$0xf]  ;;  %v2947_v29 = vor.u32 %v3381_v12, %v2946_v11  ;;  %v2743_v41 = vor.u32 %v3330_v19, %v2742_v18 }
  0x52   : > { %1390 = vmatpush.bf16.msra.mxu1 %v2875_v57  ;;  %v3932_v16 = vld [vmem:[%s3917_s28] sm:$0xff]  ;;  %v3935_v17 = vld [vmem:[%s3917_s28 + $0x8] sm:$0xff]  ;;  %v3354_v21 = vld [vmem:[#allocation6 + $0xc8] sm:$0xf0]  ;;  %v3043_v30 = vor.u32 %v3405_v15, %v3042_v13  ;;  %vm362_vm0 = vsmask.f32 7424 }
  0x53   : > { %1439 = vmatpush.bf16.msra.mxu2 %v2971_v58  ;;  %v2934_v22 = vld [vmem:[#allocation6 + $0x180] sm:$0xf]  ;;  %v3378_v24 = vld [vmem:[#allocation6 + $0x188] sm:$0xf0]  ;;  %v364_v25 = vshrl.u32 %v3932_v16, 16  ;;  %v366_v26 = vshll.u32 %v3932_v16, 16  ;;  %v2839_v42 = vor.u32 %v3354_v21, %v2838_v20 }
  0x54   : > { %1488 = vmatpush.bf16.msra.mxu3 %v3067_v62  ;;  %v371_v27 = vshll.u32 %v3935_v17, 16  ;;  %v3030_v31 = vld [vmem:[#allocation6 + $0x240] sm:$0xf]  ;;  %v3402_v32 = vld [vmem:[#allocation6 + $0x248] sm:$0xf0]  ;;  %v375_v33 = vshrl.u32 %v3935_v17, 16  ;;  %v2935_v43 = vor.u32 %v3378_v24, %v2934_v22 }
  0x55   : > { %1342 = vmatpush.bf16.msra.mxu0 %v2767_v5  ;;  %v368_v34 = vrot.slane %v366_v26, 1  ;;  %v466_v35 = vrot.slane %v364_v25, 1  ;;  %v467_v36 = vrot.slane %v366_v26, 2  ;;  %v3374_v39 = vld [vmem:[#allocation6 + $0x16c] sm:$0xf]  ;;  %vm439_vm1 = vcmask 1046528  }
  0x56   : > { %1391 = vmatpush.bf16.msra.mxu1 %v2863_v9  ;;  %v469_v37 = vrot.slane %v375_v33, 1  ;;  %v470_v38 = vrot.slane %v371_v27, 2  ;;  %v2924_v40 = vld [vmem:[#allocation6 + $0x174] sm:$0xf0]  ;;  %v3350_v44 = vld [vmem:[#allocation6 + $0xac] sm:$0xf]  ;;  %v3031_v50 = vor.u32 %v3402_v32, %v3030_v31 }
  0x57   : > { %1440 = vmatpush.bf16.msra.mxu2 %v2959_v10  ;;  %v2828_v45 = vld [vmem:[#allocation6 + $0xb4] sm:$0xf0]  ;;  %v369_v46 = vor.u32 %v368_v34, %v364_v25  ;;  %v373_v47 = vrot.slane %v371_v27, 1  ;;  %v440_v48 = vrot.slane %v3932_v16, 1  ;;  %v441_v49 = vrot.slane %v3935_v17, 1  ;;  %v3946_v59 = vld [vmem:[%s3917_s28 + $0x10] sm:$0xff] }
  0x58   : > { %1489 = vmatpush.bf16.msra.mxu3 %v3055_v14  ;;  %v468_v51 = vor.u32 %v467_v36, %v466_v35  ;;  %v471_v52 = vor.u32 %v470_v38, %v469_v37  ;;  %v2927_v53 = vor.u32 %v3374_v39, %v2924_v40  ;;  %v3210_v54 = vld [vmem:[#allocation6 + $0x3a8] sm:$0xf]  ;;  %v3447_v55 = vld [vmem:[#allocation6 + $0x3b0] sm:$0xf0]  ;;  %vm465_vm2 = vsmask.f32 6400 }
  0x59   : > { %1343 = vmatpush.bf16.msra.mxu0 %v2755_v23  ;;  %v2831_v56 = vor.u32 %v3350_v44, %v2828_v45  ;;  %v3371_v57 = vld [vmem:[#allocation6 + $0x154] sm:$0xf]  ;;  %v2912_v58 = vld [vmem:[#allocation6 + $0x15c] sm:$0xf0]  ;;  %v3949_v62 = vsel %vm362_vm0, %v369_v46, %v373_v47  ;;  %v3952_v63 = vsel %vm439_vm1, %v440_v48, %v441_v49  ;;  %v3211_v0 = vor.u32 %v3447_v55, %v3210_v54  ;;  %v3198_v3 = vld [vmem:[#allocation6 + $0x390] sm:$0xf] }
  0x5a   : > { %1392 = vmatpush.bf16.msra.mxu1 %v2851_v28  ;;  %v3347_v60 = vld [vmem:[#allocation6 + $0x94] sm:$0xf]  ;;  %v2816_v61 = vld [vmem:[#allocation6 + $0x9c] sm:$0xf0]  ;;  %v3955_v1 = vsel %vm465_vm2, %v468_v51, %v471_v52  ;;  %v2915_v2 = vor.u32 %v3371_v57, %v2912_v58  ;;  %v3444_v4 = vld [vmem:[#allocation6 + $0x398] sm:$0xf0]  ;;  %v377_v22 = vor.u32 %v375_v33, %v373_v47 }
  0x5b   : > { %1441 = vmatpush.bf16.msra.mxu2 %v2947_v29  ;;  %v2819_v5 = vor.u32 %v3347_v60, %v2816_v61  ;;  %v379_v6 = vshll.u32 %v3946_v59, 16  ;;  %v383_v7 = vshrl.u32 %v3946_v59, 16  ;;  %v3199_v8 = vor.u32 %v3444_v4, %v3198_v3  ;;  %v3368_v9 = vld [vmem:[#allocation6 + $0x13c] sm:$0xf]  ;;  %v2900_v10 = vld [vmem:[#allocation6 + $0x144] sm:$0xf0] }
  0x5c   : > { %1490 = vmatpush.bf16.msra.mxu3 %v3043_v30  ;;  %v3186_v11 = vld [vmem:[#allocation6 + $0x378] sm:$0xf]  ;;  %v2903_v12 = vor.u32 %v3368_v9, %v2900_v10  ;;  %v3441_v13 = vld [vmem:[#allocation6 + $0x380] sm:$0xf0]  ;;  %v3344_v14 = vld [vmem:[#allocation6 + $0x7c] sm:$0xf] }
  0x5d   : > { %1344 = vmatpush.bf16.msra.mxu0 %v2743_v41  ;;  %v2804_v15 = vld [vmem:[#allocation6 + $0x84] sm:$0xf0]  ;;  %v3187_v19 = vor.u32 %v3441_v13, %v3186_v11  ;;  %v473_v20 = vrot.slane %v383_v7, 1  ;;  %v474_v21 = vrot.slane %v379_v6, 2  ;;  %v381_v23 = vrot.slane %v379_v6, 1  ;;  %v3967_v26 = vld [vmem:[%s3917_s28 + $0x18] sm:$0xff] }
  0x5e   : > { %1393 = vmatpush.bf16.msra.mxu1 %v2839_v42  ;;  %v2807_v18 = vor.u32 %v3344_v14, %v2804_v15  ;;  %v443_v24 = vrot.slane %v3946_v59, 1  ;;  %v387_v30 = vshll.u32 %v3967_v26, 16  ;;  %v391_v31 = vshrl.u32 %v3967_v26, 16  ;;  %v3365_v32 = vld [vmem:[#allocation6 + $0x124] sm:$0xf]  ;;  %v3986_v47 = vld [vmem:[%s3917_s28 + $0x20] sm:$0xff] }
  0x5f   : > { %1442 = vmatpush.bf16.msra.mxu2 %v2935_v43  ;;  %v475_v25 = vor.u32 %v474_v21, %v473_v20  ;;  %v3970_v27 = vsel %vm362_vm0, %v377_v22, %v381_v23  ;;  %v2888_v33 = vld [vmem:[#allocation6 + $0x12c] sm:$0xf0]  ;;  %v3174_v34 = vld [vmem:[#allocation6 + $0x360] sm:$0xf]  ;;  %v3438_v36 = vld [vmem:[#allocation6 + $0x368] sm:$0xf0]  ;;  %v385_v43 = vor.u32 %v383_v7, %v381_v23 }
  0x60   : > { %1491 = vmatpush.bf16.msra.mxu3 %v3031_v50  ;;  %1345 = vmatmul.bf16.vlgmr.msra.gmra.mxu0 %v3932_v16  ;;  %v3973_v28 = vsel %vm439_vm1, %v441_v49, %v443_v24  ;;  %v2891_v35 = vor.u32 %v3365_v32, %v2888_v33  ;;  %v3341_v37 = vld [vmem:[#allocation6 + $0x64] sm:$0xf]  ;;  %v2792_v38 = vld [vmem:[#allocation6 + $0x6c] sm:$0xf0]  ;;  %v3175_v39 = vor.u32 %v3438_v36, %v3174_v34  ;;  %v477_v41 = vrot.slane %v391_v31, 1  ;;  %s3317_s16 = sshll.u32 %s3819_s22, 3 }
  0x61   : > { %1394 = vmatmul.bf16.vlgmr.msra.gmra.mxu1 %v3949_v62  ;;  %1533 = vmatpush.bf16.msrb.mxu0 %v3211_v0  ;;  %v3976_v29 = vsel %vm465_vm2, %v471_v52, %v475_v25  ;;  %v2795_v40 = vor.u32 %v3341_v37, %v2792_v38  ;;  %v478_v42 = vrot.slane %v387_v30, 2  ;;  %v389_v44 = vrot.slane %v387_v30, 1  ;;  %v2876_v54 = vld [vmem:[#allocation6 + $0x114] sm:$0xf0]  ;;  %v3162_v55 = vld [vmem:[#allocation6 + $0x348] sm:$0xf]  ;;  %s2592_s6 = scalar_lea.hbm %s4463_s5, %s3317_s16 }
  0x62   : > { %1582 = vmatpush.bf16.msrb.mxu1 %v2831_v56  ;;  %1443 = vmatmul.bf16.vlgmr.msra.gmra.mxu2 %v3952_v63  ;;  %v445_v45 = vrot.slane %v3967_v26, 1  ;;  %v395_v51 = vshll.u32 %v3986_v47, 16  ;;  %v399_v52 = vshrl.u32 %v3986_v47, 16  ;;  %v3435_v57 = vld [vmem:[#allocation6 + $0x350] sm:$0xf0]  ;;  %v447_v6 = vrot.slane %v3986_v47, 1 }
  0x63   : > { %1631 = vmatpush.bf16.msrb.mxu2 %v2927_v53  ;;  %1492 = vmatmul.bf16.vlgmr.msra.gmra.mxu3 %v3955_v1  ;;  %v479_v46 = vor.u32 %v478_v42, %v477_v41  ;;  %v3989_v48 = vsel %vm362_vm0, %v385_v43, %v389_v44  ;;  %v3362_v53 = vld [vmem:[#allocation6 + $0x10c] sm:$0xf]  ;;  %v2780_v60 = vld [vmem:[#allocation6 + $0x54] sm:$0xf0]  ;;  %v3163_v61 = vor.u32 %v3435_v57, %v3162_v55  ;;  %v3359_v14 = vld [vmem:[#allocation6 + $0xf4] sm:$0xf] }
  0x64   : > { %v3992_v49 = vsel %vm439_vm1, %v443_v24, %v445_v45  ;;  %v2879_v56 = vor.u32 %v3362_v53, %v2876_v54  ;;  %v3338_v58 = vld [vmem:[#allocation6 + $0x4c] sm:$0xf]  ;;  %v482_v3 = vrot.slane %v395_v51, 2  ;;  %v393_v4 = vor.u32 %v391_v31, %v389_v44  ;;  %v2864_v15 = vld [vmem:[#allocation6 + $0xfc] sm:$0xf0]  ;;  %s2707_s17 = sshll.u32 %s3913_s15, 3 }
  0x65   : > { %1534 = vmatpush.bf16.msrb.mxu0 %v3199_v8  ;;  %v3995_v50 = vsel %vm465_vm2, %v475_v25, %v479_v46  ;;  %v2783_v0 = vor.u32 %v3338_v58, %v2780_v60  ;;  %v4005_v8 = vld [vmem:[%s3917_s28 + $0x28] sm:$0xff]  ;;  %v4011_v10 = vsel %vm439_vm1, %v445_v45, %v447_v6  ;;  %v3432_v20 = vld [vmem:[#allocation6 + $0x338] sm:$0xf0]  ;;  %v3335_v21 = vld [vmem:[#allocation6 + $0x34] sm:$0xf]  ;;  %vm511_vm3 = vcmask 1045504  }
  0x66   : > { %1583 = vmatpush.bf16.msrb.mxu1 %v2819_v5  ;;  %v397_v5 = vrot.slane %v395_v51, 1  ;;  %4481 = vst [vmem:[#allocation16_spill] sm:$0xff] %v4011_v10  ;;  %v407_v13 = vshrl.u32 %v4005_v8, 16  ;;  %v2768_v22 = vld [vmem:[#allocation6 + $0x3c] sm:$0xf0]  ;;  %v449_v33 = vrot.slane %v4005_v8, 1 }
  0x67   : > { %1632 = vmatpush.bf16.msrb.mxu2 %v2915_v2  ;;  %v481_v2 = vrot.slane %v399_v52, 1  ;;  %v2771_v24 = vor.u32 %v3335_v21, %v2768_v22  ;;  %v3356_v43 = vld [vmem:[#allocation6 + $0xdc] sm:$0xf]  ;;  %v2852_v44 = vld [vmem:[#allocation6 + $0xe4] sm:$0xf0]  ;;  %vm2275_vm4 = vcmask 1041409  }
  0x68   : > { %v4008_v9 = vsel %vm362_vm0, %v393_v4, %v397_v5  ;;  %v485_v25 = vrot.slane %v407_v13, 1  ;;  %v401_v31 = vor.u32 %v399_v52, %v397_v5  ;;  %v4030_v37 = vsel %vm439_vm1, %v447_v6, %v449_v33  ;;  %v3429_v52 = vld [vmem:[#allocation6 + $0x320] sm:$0xf0]  ;;  %v3332_v53 = vld [vmem:[#allocation6 + $0x1c] sm:$0xf]  ;;  %s292_s8 = scalar_lea.vmem [#allocation11], %s2707_s17 }
  0x69   : > { %1535 = vmatpush.bf16.msrb.mxu0 %v3187_v19  ;;  %v483_v7 = vor.u32 %v482_v3, %v481_v2  ;;  %v2867_v19 = vor.u32 %v3359_v14, %v2864_v15  ;;  %4482 = vst [vmem:[#allocation17_spill] sm:$0xff] %v4030_v37  ;;  %v2855_v51 = vor.u32 %v3356_v43, %v2852_v44  ;;  %v2756_v54 = vld [vmem:[#allocation6 + $0x24] sm:$0xf0]  ;;  %v3395_v57 = vld [vmem:[#allocation6 + $0x214] sm:$0xf]  ;;  %vm2277_vm5 = vcmask 1042434  }
  0x6a   : > { %1584 = vmatpush.bf16.msrb.mxu1 %v2807_v18  ;;  %v3150_v18 = vld [vmem:[#allocation6 + $0x330] sm:$0xf]  ;;  %v3008_v58 = vld [vmem:[#allocation6 + $0x21c] sm:$0xf0]  ;;  %v3389_v5 = vld [vmem:[#allocation6 + $0x1e4] sm:$0xf] }
  0x6b   : > { %1633 = vmatpush.bf16.msrb.mxu2 %v2903_v12  ;;  %v4014_v11 = vsel %vm465_vm2, %v479_v46, %v483_v7  ;;  %v403_v12 = vshll.u32 %v4005_v8, 16  ;;  %v3151_v23 = vor.u32 %v3432_v20, %v3150_v18  ;;  %v3138_v46 = vld [vmem:[#allocation6 + $0x318] sm:$0xf]  ;;  %v3011_v60 = vor.u32 %v3395_v57, %v3008_v58  ;;  %v2984_v6 = vld [vmem:[#allocation6 + $0x1ec] sm:$0xf0]  ;;  %s2594_s11 = sshll.u32 %s292_s8, 4  ;;  %s2595_s11 = int_to_ptr.vmem [resolvable:$true] %s2594_s11 }
  0x6c   : > { %v3139_v55 = vor.u32 %v3429_v52, %v3138_v46  ;;  %v2987_v18 = vor.u32 %v3389_v5, %v2984_v6  ;;  %v2960_v46 = vld [vmem:[#allocation6 + $0x1bc] sm:$0xf0]  ;;  %v3380_v52 = vld [vmem:[#allocation6 + $0x19c] sm:$0xf]  ;;  %vm2279_vm6 = vcmask 1043459   ;;  %vm2281_vm7 = vcmask 1044484  }
  0x6d   : > { %1536 = vmatpush.bf16.msrb.mxu0 %v3175_v39  ;;  %v486_v30 = vrot.slane %v403_v12, 2  ;;  %v405_v32 = vrot.slane %v403_v12, 1  ;;  %v3398_v39 = vld [vmem:[#allocation6 + $0x22c] sm:$0xf]  ;;  %vm2283_vm8 = vcmask 1045509   ;;  %vm2285_vm9 = vcmask 1046534  }
  0x6e   : > { %1585 = vmatpush.bf16.msrb.mxu1 %v2795_v40  ;;  %v3020_v40 = vld [vmem:[#allocation6 + $0x234] sm:$0xf0]  ;;  %vm2287_vm10 = vcmask 1047559   ;;  %vm2137_vm11 = vcmask 1044480   ;;  %vm2202_vm12 = vcmask 1043456   ;;  %s2596_s13 = sshll.u32 %s2592_s6, 4  ;;  %s2597_s13 = int_to_ptr.hbm [resolvable:$true] %s2596_s13 }
  0x6f   : > { %1634 = vmatpush.bf16.msrb.mxu2 %v2891_v35  ;;  %v487_v34 = vor.u32 %v486_v30, %v485_v25  ;;  %v4024_v35 = vld [vmem:[%s3917_s28 + $0x30] sm:$0xff]  ;;  %v4027_v36 = vsel %vm362_vm0, %v401_v31, %v405_v32  ;;  %v3023_v45 = vor.u32 %v3398_v39, %v3020_v40  ;;  %v3353_v30 = vld [vmem:[#allocation6 + $0xc4] sm:$0xf]  ;;  %s2582_s14 = scalar_lea.sflag [#allocation5], %s3913_s15  ;;  %s3699_s7 = sshra.s32 %s2597_s13, 4  ;;  %s3700_s7 = int_to_ptr.hbm [resolvable:$true] %s3699_s7 }
  0x70   : > { %1350 = vmatmul.bf16.gmra.mxu0 %v3935_v17  ;;  %v411_v41 = vshll.u32 %v4024_v35, 16  ;;  %v415_v42 = vshrl.u32 %v4024_v35, 16  ;;  %v451_v14 = vrot.slane %v4024_v35, 1  ;;  %v2840_v31 = vld [vmem:[#allocation6 + $0xcc] sm:$0xf0]  ;;  %s3701_s12 = scalar_lea.hbm %s3700_s7, 8  ;;  %p3706_p11 = scmp.lt.s32.totalorder %s3700_s7, %s4463_s5 }
  0x71   : > { %1399 = vmatmul.bf16.gmra.mxu1 %v3970_v27  ;;  %1537 = vmatpush.bf16.msrb.mxu0 %v3163_v61  ;;  %v4033_v38 = vsel %vm465_vm2, %v483_v7, %v487_v34  ;;  %v3392_v61 = vld [vmem:[#allocation6 + $0x1fc] sm:$0xf]  ;;  %v409_v7 = vor.u32 %v407_v13, %v405_v32  ;;  %v3386_v13 = vld [vmem:[#allocation6 + $0x1cc] sm:$0xf]  ;;  %v3329_v40 = vld [vmem:[#allocation6 + $0x4] sm:$0xf]  ;;  %p3702_p1 = scmp.ne.s32.totalorder %s3700_s7, %s3701_s12 }
  0x72   : > { %1448 = vmatmul.bf16.gmra.mxu2 %v3973_v28  ;;  %1586 = vmatpush.bf16.msrb.mxu1 %v2783_v0  ;;  %v2996_v0 = vld [vmem:[#allocation6 + $0x204] sm:$0xf0]  ;;  %v489_v2 = vrot.slane %v415_v42, 1  ;;  %v490_v3 = vrot.slane %v411_v41, 2  ;;  %v413_v12 = vrot.slane %v411_v41, 1  ;;  %v4051_v21 = vsel %vm439_vm1, %v449_v33, %v451_v14  ;;  %s3705_s27 = scalar_lea.hbm %s4463_s5, 16 }
  0x73   : > { %1497 = vmatmul.bf16.gmra.mxu3 %v3976_v29  ;;  %1635 = vmatpush.bf16.msrb.mxu2 %v2879_v56  ;;  %v2759_v56 = vor.u32 %v3332_v53, %v2756_v54  ;;  %v2999_v4 = vor.u32 %v3392_v61, %v2996_v0  ;;  %4483 = vst [vmem:[#allocation18_spill] sm:$0xff] %v4051_v21  ;;  %v3126_v33 = vld [vmem:[#allocation6 + $0x300] sm:$0xf]  ;;  %v3426_v39 = vld [vmem:[#allocation6 + $0x308] sm:$0xf0]  ;;  %p3703_p4 = pnand %p3702_p1, %p3884_p7  ;;  %p3707_p9 = scmp.lt.s32.totalorder %s3705_s27, %s3701_s12 }
  0x74   : > { %1680 = vmatpush.bf16.msrb.mxu3 %v3023_v45  ;;  %v491_v15 = vor.u32 %v490_v3, %v489_v2  ;;  %v4048_v20 = vsel %vm362_vm0, %v409_v7, %v413_v12  ;;  %v2744_v41 = vld [vmem:[#allocation6 + $0xc] sm:$0xf0]  ;;  %v3127_v43 = vor.u32 %v3426_v39, %v3126_v33  ;;  %v3383_v45 = vld [vmem:[#allocation6 + $0x1b4] sm:$0xf]  ;;  %v2948_v53 = vld [vmem:[#allocation6 + $0x1a4] sm:$0xf0]  ;;  %v417_v58 = vor.u32 %v415_v42, %v413_v12 }
  0x75   : > { %1538 = vmatpush.bf16.msrb.mxu0 %v3151_v23  ;;  %v2972_v23 = vld [vmem:[#allocation6 + $0x1d4] sm:$0xf0]  ;;  %v2747_v44 = vor.u32 %v3329_v40, %v2744_v41  ;;  %v2951_v57 = vor.u32 %v3380_v52, %v2948_v53  ;;  %v3377_v3 = vld [vmem:[#allocation6 + $0x184] sm:$0xf]  ;;  %v2834_v42 = vld [vmem:[#allocation6 + $0xb0] sm:$0xf]  ;;  %p3704_p8 = pneg %p3703_p4  ;;  %p3708_p2 = por %p3707_p9, %p3706_p11 }
  0x76   : > { %1587 = vmatpush.bf16.msrb.mxu1 %v2771_v24  ;;  %v4054_v22 = vsel %vm465_vm2, %v487_v34, %v491_v15  ;;  %v2975_v32 = vor.u32 %v3386_v13, %v2972_v23  ;;  %v2843_v34 = vor.u32 %v3353_v30, %v2840_v31  ;;  %v3352_v12 = vld [vmem:[#allocation6 + $0xb8] sm:$0xf0]  ;;  %v3422_v23 = vld [vmem:[#allocation6 + $0x2ec] sm:$0xf]  ;;  %v3116_v30 = vld [vmem:[#allocation6 + $0x2f4] sm:$0xf0] }
  0x77   : > { %1636 = vmatpush.bf16.msrb.mxu2 %v2867_v19  ;;  %v4045_v19 = vld [vmem:[%s3917_s28 + $0x38] sm:$0xff]  ;;  %v3119_v31 = vor.u32 %v3422_v23, %v3116_v30  ;;  %v3349_v53 = vld [vmem:[#allocation6 + $0xa0] sm:$0xf0]  ;;  %v3346_v23 = vld [vmem:[#allocation6 + $0x88] sm:$0xf0]  ;;  %p3709_p10 = pnand %p3708_p2, %p3704_p8 }
  0x78   : > { %1681 = vmatpush.bf16.msrb.mxu3 %v3011_v60  ;;  %v419_v24 = vshll.u32 %v4045_v19, 16  ;;  %v423_v25 = vshrl.u32 %v4045_v19, 16  ;;  %v453_v61 = vrot.slane %v4045_v19, 1  ;;  %v3212_v39 = vld [vmem:[#allocation6 + $0x3b4] sm:$0xf0] }
  0x79   : > { %1539 = vmatpush.bf16.msrb.mxu0 %v3139_v55 }
  0x7a   : > { %1588 = vmatpush.bf16.msrb.mxu1 %v2759_v56  ;;  %v493_v54 = vrot.slane %v423_v25, 1  ;;  %v494_v55 = vrot.slane %v419_v24, 2  ;;  %v310_v56 = vld [vmem:[%s3917_s28 + $0x40] sm:$0xf]  ;;  %v421_v60 = vrot.slane %v419_v24, 1  ;;  %v4070_v7 = vsel %vm439_vm1, %v451_v14, %v453_v61 }
  0x7b   : > { %1637 = vmatpush.bf16.msrb.mxu2 %v2855_v51  ;;  %v2963_v51 = vor.u32 %v3383_v45, %v2960_v46  ;;  %v360_v2 = vunpack.c.l.b16 %v310_v56  ;;  %4484 = vst [vmem:[#allocation19_spill] sm:$0xff] %v4070_v7  ;;  %v3104_v56 = vld [vmem:[#allocation6 + $0x2dc] sm:$0xf0] }
  0x7c   : > { %1682 = vmatpush.bf16.msrb.mxu3 %v2999_v4  ;;  %v495_v0 = vor.u32 %v494_v55, %v493_v54  ;;  %v2936_v4 = vld [vmem:[#allocation6 + $0x18c] sm:$0xf0]  ;;  %v4067_v6 = vsel %vm362_vm0, %v417_v58, %v421_v60  ;;  %v425_v41 = vor.u32 %v423_v25, %v421_v60  ;;  %v2822_v25 = vld [vmem:[#allocation6 + $0x98] sm:$0xf]  ;;  %v3419_v54 = vld [vmem:[#allocation6 + $0x2d4] sm:$0xf] }
  0x7d   : > { %1540 = vmatpush.bf16.msrb.mxu0 %v3127_v43  ;;  %v2939_v5 = vor.u32 %v3377_v3, %v2936_v4  ;;  %v4075_v13 = vpack.c.b16 %v360_v2, %v360_v2  ;;  %v2823_v55 = vor.u32 %v3349_v53, %v2822_v25  ;;  %v3443_v58 = vld [vmem:[#allocation6 + $0x394] sm:$0xf]  ;;  %v3200_v60 = vld [vmem:[#allocation6 + $0x39c] sm:$0xf0]  ;;  %v513_v2 = vrot.slane %v3935_v17, 2 }
  0x7e   : > { %1589 = vmatpush.bf16.msrb.mxu1 %v2747_v44 }
  0x7f   : > { %1638 = vmatpush.bf16.msrb.mxu2 %v2843_v34  ;;  %v427_v14 = vshll.u32 %v4075_v13, 16  ;;  %v497_v24 = vshrl.u32 %v4075_v13, 16  ;;  %v3446_v34 = vld [vmem:[#allocation6 + $0x3ac] sm:$0xf]  ;;  %v455_v44 = vrot.slane %v4075_v13, 1 }
  0x80   : > { %1355 = vmatmul.bf16.gmra.mxu0 %v3946_v59  ;;  %1683 = vmatpush.bf16.msrb.mxu3 %v2987_v18  ;;  %v4073_v18 = vsel %vm465_vm2, %v491_v15, %v495_v0  ;;  %v2835_v15 = vor.u32 %v3352_v12, %v2834_v42  ;;  %v3215_v40 = vor.u32 %v3446_v34, %v3212_v39  ;;  %v2810_v12 = vld [vmem:[#allocation6 + $0x80] sm:$0xf] }
  0x81   : > { %1404 = vmatmul.bf16.gmra.mxu1 %v3989_v48  ;;  %1729 = vmatpush.bf16.msra.mxu0 %v3119_v31  ;;  %v500_v33 = vrot.slane %v427_v14, 2  ;;  %v429_v43 = vrot.slane %v427_v14, 1  ;;  %v3416_v14 = vld [vmem:[#allocation6 + $0x2bc] sm:$0xf] }
  0x82   : > { %1453 = vmatmul.bf16.gmra.mxu2 %v3992_v49  ;;  %1778 = vmatpush.bf16.msra.mxu1 %v3215_v40 }
  0x83   : > { %1502 = vmatmul.bf16.gmra.mxu3 %v3995_v50  ;;  %1827 = vmatpush.bf16.msra.mxu2 %v2835_v15  ;;  %v4085_v46 = vsel %vm362_vm0, %v425_v41, %v429_v43  ;;  %v3092_v15 = vld [vmem:[#allocation6 + $0x2c4] sm:$0xf0]  ;;  %v3440_v41 = vld [vmem:[#allocation6 + $0x37c] sm:$0xf] }
  0x84   : > { %1684 = vmatpush.bf16.msrb.mxu3 %v2975_v32  ;;  %v499_v32 = vrot.slane %v497_v24, 1  ;;  %v2811_v24 = vor.u32 %v3346_v23, %v2810_v12  ;;  %v3095_v31 = vor.u32 %v3416_v14, %v3092_v15  ;;  %v3188_v43 = vld [vmem:[#allocation6 + $0x384] sm:$0xf0] }
  0x86   : > { %v501_v45 = vor.u32 %v500_v33, %v499_v32 }
  0x87   : > { %1828 = vmatpush.bf16.msra.mxu2 %v2823_v55 }
  0x88   : > { %1685 = vmatpush.bf16.msrb.mxu3 %v2963_v51  ;;  %v4088_v51 = vsel %vm439_vm1, %v453_v61, %v455_v44  ;;  %v4091_v52 = vsel %vm465_vm2, %v495_v0, %v501_v45  ;;  %v3203_v61 = vor.u32 %v3443_v58, %v3200_v60  ;;  %v512_v0 = vrot.slane %v3932_v16, 2 }
  0x89   : > { %4485 = vst [vmem:[#allocation20_spill] sm:$0xff] %v4088_v51  ;;  %v3191_v44 = vor.u32 %v3440_v41, %v3188_v43  ;;  %v515_v45 = vrot.slane %v3946_v59, 2 }
  0x8a   : > { %1779 = vmatpush.bf16.msra.mxu1 %v3203_v61  ;;  %v4100_v4 = vsel %vm511_vm3, %v512_v0, %v513_v2  ;;  %v2798_v61 = vld [vmem:[#allocation6 + $0x68] sm:$0xf]  ;;  %v3343_v0 = vld [vmem:[#allocation6 + $0x70] sm:$0xf0] }
  0x8b   : > { %1829 = vmatpush.bf16.msra.mxu2 %v2811_v24 }
  0x8c   : > { %1686 = vmatpush.bf16.msrb.mxu3 %v2951_v57  ;;  %v3107_v57 = vor.u32 %v3419_v54, %v3104_v56  ;;  %v4110_v56 = vsel %vm511_vm3, %v513_v2, %v515_v45 }
  0x8e   : > { %1730 = vmatpush.bf16.msra.mxu0 %v3107_v57  ;;  %1780 = vmatpush.bf16.msra.mxu1 %v3191_v44 }
  0x90   : > { %1360 = vmatmul.bf16.gmra.mxu0 %v3967_v26  ;;  %1687 = vmatpush.bf16.msrb.mxu3 %v2939_v5 }
  0x91   : > { %1409 = vmatmul.bf16.gmra.mxu1 %v4008_v9 }
  0x92   : > { %1458 = vmatmul.bf16.gmra.mxu2 %v4011_v10  ;;  %1731 = vmatpush.bf16.msra.mxu0 %v3095_v31  ;;  %v3437_v31 = vld [vmem:[#allocation6 + $0x364] sm:$0xf] }
  0x93   : > { %1507 = vmatmul.bf16.gmra.mxu3 %v4014_v11 }
  0xa0   : > { %1365 = vmatmul.bf16.gmra.mxu0 %v3986_v47 }
  0xa1   : > { %1414 = vmatmul.bf16.gmra.mxu1 %v4027_v36 }
  0xa2   : > { %1463 = vmatmul.bf16.gmra.mxu2 %v4030_v37 }
  0xa3   : > { %1512 = vmatmul.bf16.gmra.mxu3 %v4033_v38 }
  0xb0   : > { %1370 = vmatmul.bf16.gmra.mxu0 %v4005_v8 }
  0xb1   : > { %1419 = vmatmul.bf16.gmra.mxu1 %v4048_v20 }
  0xb2   : > { %1468 = vmatmul.bf16.gmra.mxu2 %v4051_v21 }
  0xb3   : > { %1517 = vmatmul.bf16.gmra.mxu3 %v4054_v22 }
  0xc0   : > { %1375 = vmatmul.bf16.gmra.mxu0 %v4024_v35 }
  0xc1   : > { %1424 = vmatmul.bf16.gmra.mxu1 %v4067_v6 }
  0xc2   : > { %1473 = vmatmul.bf16.gmra.mxu2 %v4070_v7 }
  0xc3   : > { %1522 = vmatmul.bf16.gmra.mxu3 %v4073_v18 }
  0xd0   : > { %1380 = vmatmul.bf16.gmra.mxu0 %v4045_v19 }
  0xd1   : > { %1429 = vmatmul.bf16.gmra.mxu1 %v4085_v46 }
  0xd2   : > { %1478 = vmatmul.bf16.gmra.mxu2 %v4088_v51 }
  0xd3   : > { %1527 = vmatmul.bf16.gmra.mxu3 %v4091_v52 }
  0xdd   : > { %v1346_v3 = vpop.f32.mrf.mxu0 }
  0xde   : > { %v1395_v5 = vpop.f32.mrf.mxu1 }
  0xdf   : > { %v1396_v42 = vadd.f32 %v1395_v5, %v1346_v3  ;;  %v3413_v3 = vld [vmem:[#allocation6 + $0x2a4] sm:$0xf]  ;;  %v2799_v5 = vor.u32 %v3343_v0, %v2798_v61  ;;  %v3068_v0 = vld [vmem:[#allocation6 + $0x294] sm:$0xf0] }
  0xe0   : > { %1541 = vmatmul.bf16.vlgmr.msrb.gmra.mxu0 %v4100_v4 }
  0xe1   : > { %1590 = vmatmul.bf16.vlgmr.msrb.gmra.mxu1 %v3932_v16  ;;  %1830 = vmatpush.bf16.msra.mxu2 %v2799_v5 }
  0xe2   : > { %1639 = vmatmul.bf16.vlgmr.msrb.gmra.mxu2 %v3949_v62 }
  0xe3   : > { %1688 = vmatmul.bf16.vlgmr.msrb.gmra.mxu3 %v3952_v63 }
  0xe5   : > { %v1444_v30 = vpop.f32.mrf.mxu2  ;;  %v1348_v34 = vpop.f32.mrf.mxu0 }
  0xe6   : > { %v1445_v32 = vadd.f32 %v1444_v30, %v1396_v42  ;;  %v1493_v33 = vpop.f32.mrf.mxu3  ;;  %v1397_v39 = vpop.f32.mrf.mxu1  ;;  %v3080_v42 = vld [vmem:[#allocation6 + $0x2ac] sm:$0xf0] }
  0xe7   : > { %v1398_v16 = vadd.f32 %v1397_v39, %v1348_v34  ;;  %v3083_v2 = vor.u32 %v3413_v3, %v3080_v42  ;;  %v517_v34 = vrot.slane %v3967_v26, 2 }
  0xe8   : > { %v4106_v40 = vadd.f32 %v1493_v33, %v1445_v32  ;;  %v3176_v32 = vld [vmem:[#allocation6 + $0x36c] sm:$0xf0] }
  0xe9   : > { %1732 = vmatpush.bf16.msra.mxu0 %v3083_v2  ;;  %v3179_v33 = vor.u32 %v3437_v31, %v3176_v32  ;;  %v4122_v44 = vsel %vm511_vm3, %v515_v45, %v517_v34 }
  0xeb   : > { %1781 = vmatpush.bf16.msra.mxu1 %v3179_v33 }
  0xed   : > { %v1446_v25 = vpop.f32.mrf.mxu2  ;;  %v1351_v55 = vpop.f32.mrf.mxu0 }
  0xee   : > { %v1447_v53 = vadd.f32 %v1446_v25, %v1398_v16  ;;  %v1495_v54 = vpop.f32.mrf.mxu3  ;;  %v1400_v57 = vpop.f32.mrf.mxu1 }
  0xef   : > { %v1401_v60 = vadd.f32 %v1400_v57, %v1351_v55  ;;  %v2786_v55 = vld [vmem:[#allocation6 + $0x50] sm:$0xf]  ;;  %v3340_v57 = vld [vmem:[#allocation6 + $0x58] sm:$0xf0] }
  0xf0   : > { %v4112_v58 = vadd.f32 %v1495_v54, %v1447_v53  ;;  %1546 = vmatmul.bf16.gmra.mxu0 %v4110_v56  ;;  %v2787_v61 = vor.u32 %v3340_v57, %v2786_v55  ;;  %v3337_v55 = vld [vmem:[#allocation6 + $0x40] sm:$0xf0]  ;;  %v3407_v57 = vld [vmem:[#allocation6 + $0x274] sm:$0xf] }
  0xf1   : > { %1595 = vmatmul.bf16.gmra.mxu1 %v3935_v17 }
  0xf2   : > { %1644 = vmatmul.bf16.gmra.mxu2 %v3970_v27 }
  0xf3   : > { %1693 = vmatmul.bf16.gmra.mxu3 %v3973_v28  ;;  %1831 = vmatpush.bf16.msra.mxu2 %v2787_v61  ;;  %v3056_v61 = vld [vmem:[#allocation6 + $0x27c] sm:$0xf0] }
  0xf5   : > { %v1449_v12 = vpop.f32.mrf.mxu2  ;;  %v1353_v24 = vpop.f32.mrf.mxu0 }
  0xf6   : > { %v1450_v23 = vadd.f32 %v1449_v12, %v1401_v60  ;;  %v1498_v14 = vpop.f32.mrf.mxu3  ;;  %v1402_v15 = vpop.f32.mrf.mxu1  ;;  %v3410_v60 = vld [vmem:[#allocation6 + $0x28c] sm:$0xf] }
  0xf7   : > { %v1403_v17 = vadd.f32 %v1402_v15, %v1353_v24  ;;  %v3071_v45 = vor.u32 %v3410_v60, %v3068_v0  ;;  %v3164_v24 = vld [vmem:[#allocation6 + $0x354] sm:$0xf0] }
  0xf8   : > { %v4118_v30 = vadd.f32 %v1498_v14, %v1450_v23  ;;  %v3434_v14 = vld [vmem:[#allocation6 + $0x34c] sm:$0xf] }
  0xf9   : > { %1733 = vmatpush.bf16.msra.mxu0 %v3071_v45  ;;  %v3167_v15 = vor.u32 %v3434_v14, %v3164_v24  ;;  %v521_v24 = vrot.slane %v4005_v8, 2 }
  0xfb   : > { %1782 = vmatpush.bf16.msra.mxu1 %v3167_v15 }
  0xfd   : > { %v1451_v39 = vpop.f32.mrf.mxu2  ;;  %v1356_v43 = vpop.f32.mrf.mxu0 }
  0xfe   : > { %v1452_v16 = vadd.f32 %v1451_v39, %v1403_v17  ;;  %v1500_v41 = vpop.f32.mrf.mxu3  ;;  %v1405_v25 = vpop.f32.mrf.mxu1  ;;  %v519_v17 = vrot.slane %v3986_v47, 2 }
  0xff   : > { %v1406_v54 = vadd.f32 %v1405_v25, %v1356_v43 }
 0x100   : > { %v4124_v53 = vadd.f32 %v1500_v41, %v1452_v16  ;;  %1551 = vmatmul.bf16.gmra.mxu0 %v4122_v44  ;;  %v4134_v16 = vsel %vm511_vm3, %v517_v34, %v519_v17  ;;  %v3059_v34 = vor.u32 %v3407_v57, %v3056_v61  ;;  %v3376_v57 = vld [vmem:[#allocation6 + $0x178] sm:$0xf0]  ;;  %v2762_v61 = vld [vmem:[#allocation6 + $0x20] sm:$0xf] }
 0x101   : > { %1600 = vmatmul.bf16.gmra.mxu1 %v3946_v59 }
 0x102   : > { %1649 = vmatmul.bf16.gmra.mxu2 %v3989_v48  ;;  %1734 = vmatpush.bf16.msra.mxu0 %v3059_v34  ;;  %v3404_v34 = vld [vmem:[#allocation6 + $0x25c] sm:$0xf] }
 0x103   : > { %1698 = vmatmul.bf16.gmra.mxu3 %v3992_v49 }
 0x105   : > { %v1454_v3 = vpop.f32.mrf.mxu2  ;;  %v1358_v12 = vpop.f32.mrf.mxu0 }
 0x106   : > { %v1455_v5 = vadd.f32 %v1454_v3, %v1406_v54  ;;  %v1503_v42 = vpop.f32.mrf.mxu3  ;;  %v1407_v2 = vpop.f32.mrf.mxu1  ;;  %v2774_v54 = vld [vmem:[#allocation6 + $0x38] sm:$0xf] }
 0x107   : > { %v1408_v59 = vadd.f32 %v1407_v2, %v1358_v12  ;;  %v2775_v60 = vor.u32 %v3337_v55, %v2774_v54  ;;  %v3431_v2 = vld [vmem:[#allocation6 + $0x334] sm:$0xf]  ;;  %v2930_v55 = vld [vmem:[#allocation6 + $0x170] sm:$0xf] }
 0x108   : > { %v4130_v23 = vadd.f32 %v1503_v42, %v1455_v5 }
 0x109   : > { %1832 = vmatpush.bf16.msra.mxu2 %v2775_v60  ;;  %v2931_v60 = vor.u32 %v3376_v57, %v2930_v55  ;;  %v2906_v55 = vld [vmem:[#allocation6 + $0x140] sm:$0xf] }
 0x10b   : > { %1876 = vmatpush.bf16.msra.mxu3 %v2931_v60  ;;  %v3370_v60 = vld [vmem:[#allocation6 + $0x148] sm:$0xf0] }
 0x10d   : > { %v1456_v31 = vpop.f32.mrf.mxu2  ;;  %v1361_v39 = vpop.f32.mrf.mxu0 }
 0x10e   : > { %v1457_v32 = vadd.f32 %v1456_v31, %v1408_v59  ;;  %v1505_v33 = vpop.f32.mrf.mxu3  ;;  %v1410_v41 = vpop.f32.mrf.mxu1  ;;  %v3152_v59 = vld [vmem:[#allocation6 + $0x33c] sm:$0xf0] }
 0x10f   : > { %v1411_v25 = vadd.f32 %v1410_v41, %v1361_v39  ;;  %v3155_v14 = vor.u32 %v3431_v2, %v3152_v59  ;;  %v4146_v39 = vsel %vm511_vm3, %v519_v17, %v521_v24 }
 0x110   : > { %v4136_v43 = vadd.f32 %v1505_v33, %v1457_v32  ;;  %1556 = vmatmul.bf16.gmra.mxu0 %v4134_v16 }
 0x111   : > { %1605 = vmatmul.bf16.gmra.mxu1 %v3967_v26 }
 0x112   : > { %1654 = vmatmul.bf16.gmra.mxu2 %v4008_v9  ;;  %1783 = vmatpush.bf16.msra.mxu1 %v3155_v14 }
 0x113   : > { %1703 = vmatmul.bf16.gmra.mxu3 %v4011_v10 }
 0x115   : > { %v1459_v0 = vpop.f32.mrf.mxu2  ;;  %v1363_v5 = vpop.f32.mrf.mxu0 }
 0x116   : > { %v1460_v3 = vadd.f32 %v1459_v0, %v1411_v25  ;;  %v1508_v45 = vpop.f32.mrf.mxu3  ;;  %v1412_v42 = vpop.f32.mrf.mxu1  ;;  %v3334_v0 = vld [vmem:[#allocation6 + $0x28] sm:$0xf0] }
 0x117   : > { %v1413_v26 = vadd.f32 %v1412_v42, %v1363_v5  ;;  %v2763_v17 = vor.u32 %v3334_v0, %v2762_v61  ;;  %v2918_v42 = vld [vmem:[#allocation6 + $0x158] sm:$0xf]  ;;  %v523_v61 = vrot.slane %v4024_v35, 2  ;;  %v2907_v0 = vor.u32 %v3370_v60, %v2906_v55 }
 0x118   : > { %v4142_v12 = vadd.f32 %v1508_v45, %v1460_v3  ;;  %v3044_v3 = vld [vmem:[#allocation6 + $0x264] sm:$0xf0] }
 0x119   : > { %v3047_v5 = vor.u32 %v3404_v34, %v3044_v3  ;;  %1833 = vmatpush.bf16.msra.mxu2 %v2763_v17  ;;  %v2894_v34 = vld [vmem:[#allocation6 + $0x128] sm:$0xf]  ;;  %v3367_v17 = vld [vmem:[#allocation6 + $0x130] sm:$0xf0] }
 0x11b   : > { %1735 = vmatpush.bf16.msra.mxu0 %v3047_v5 }
 0x11d   : > { %v1461_v15 = vpop.f32.mrf.mxu2  ;;  %v1366_v33 = vpop.f32.mrf.mxu0 }
 0x11e   : > { %v1462_v31 = vadd.f32 %v1461_v15, %v1413_v26  ;;  %v1510_v32 = vpop.f32.mrf.mxu3  ;;  %v1415_v41 = vpop.f32.mrf.mxu1  ;;  %v3373_v26 = vld [vmem:[#allocation6 + $0x160] sm:$0xf0] }
 0x11f   : > { %v1416_v54 = vadd.f32 %v1415_v41, %v1366_v33  ;;  %v3428_v33 = vld [vmem:[#allocation6 + $0x31c] sm:$0xf]  ;;  %v3140_v41 = vld [vmem:[#allocation6 + $0x324] sm:$0xf0] }
 0x120   : > { %v4148_v25 = vadd.f32 %v1510_v32, %v1462_v31  ;;  %1561 = vmatmul.bf16.gmra.mxu0 %v4146_v39  ;;  %v3143_v57 = vor.u32 %v3428_v33, %v3140_v41  ;;  %v2750_v33 = vld [vmem:[#allocation6 + $0x8] sm:$0xf]  ;;  %v3401_v41 = vld [vmem:[#allocation6 + $0x244] sm:$0xf] }
 0x121   : > { %1610 = vmatmul.bf16.gmra.mxu1 %v3986_v47  ;;  %v2919_v47 = vor.u32 %v3373_v26, %v2918_v42  ;;  %v4158_v42 = vsel %vm511_vm3, %v521_v24, %v523_v61  ;;  %v2895_v26 = vor.u32 %v3367_v17, %v2894_v34  ;;  %v3331_v24 = vld [vmem:[#allocation6 + $0x10] sm:$0xf0]  ;;  %v3361_v34 = vld [vmem:[#allocation6 + $0x100] sm:$0xf0] }
 0x122   : > { %1659 = vmatmul.bf16.gmra.mxu2 %v4027_v36  ;;  %1784 = vmatpush.bf16.msra.mxu1 %v3143_v57  ;;  %v2751_v55 = vor.u32 %v3331_v24, %v2750_v33  ;;  %v3032_v57 = vld [vmem:[#allocation6 + $0x24c] sm:$0xf0]  ;;  %v2858_v33 = vld [vmem:[#allocation6 + $0xe0] sm:$0xf]  ;;  %v3358_v24 = vld [vmem:[#allocation6 + $0xe8] sm:$0xf0] }
 0x123   : > { %1708 = vmatmul.bf16.gmra.mxu3 %v4030_v37 }
 0x124   : > { %1877 = vmatpush.bf16.msra.mxu3 %v2919_v47  ;;  %v2882_v47 = vld [vmem:[#allocation6 + $0x110] sm:$0xf]  ;;  %1834 = vmatpush.bf16.msra.mxu2 %v2751_v55  ;;  %v3355_v55 = vld [vmem:[#allocation6 + $0xd0] sm:$0xf0] }
 0x125   : > { %v1464_v45 = vpop.f32.mrf.mxu2  ;;  %v1368_v14 = vpop.f32.mrf.mxu0 }
 0x126   : > { %v1465_v2 = vadd.f32 %v1464_v45, %v1416_v54  ;;  %v1513_v59 = vpop.f32.mrf.mxu3  ;;  %v1417_v15 = vpop.f32.mrf.mxu1 }
 0x127   : > { %v1418_v32 = vadd.f32 %v1417_v15, %v1368_v14  ;;  %v3364_v15 = vld [vmem:[#allocation6 + $0x118] sm:$0xf0] }
 0x128   : > { %v4154_v31 = vadd.f32 %v1513_v59, %v1465_v2  ;;  %1878 = vmatpush.bf16.msra.mxu3 %v2907_v0  ;;  %v3035_v0 = vor.u32 %v3401_v41, %v3032_v57  ;;  %v525_v41 = vrot.slane %v4045_v19, 2  ;;  %v2859_v57 = vor.u32 %v3358_v24, %v2858_v33 }
 0x12a   : > { %1736 = vmatpush.bf16.msra.mxu0 %v3035_v0 }
 0x12c   : > { %1879 = vmatpush.bf16.msra.mxu3 %v2895_v26 }
 0x12d   : > { %v1466_v54 = vpop.f32.mrf.mxu2  ;;  %v1371_v5 = vpop.f32.mrf.mxu0 }
 0x12e   : > { %v1467_v3 = vadd.f32 %v1466_v54, %v1418_v32  ;;  %v1515_v45 = vpop.f32.mrf.mxu3  ;;  %v1420_v2 = vpop.f32.mrf.mxu1  ;;  %v2883_v32 = vor.u32 %v3364_v15, %v2882_v47  ;;  %v2870_v54 = vld [vmem:[#allocation6 + $0xf8] sm:$0xf]  ;;  %v3425_v47 = vld [vmem:[#allocation6 + $0x304] sm:$0xf]  ;;  %v3128_v15 = vld [vmem:[#allocation6 + $0x30c] sm:$0xf0] }
 0x12f   : > { %v1421_v14 = vadd.f32 %v1420_v2, %v1371_v5 }
 0x130   : > { %v4160_v59 = vadd.f32 %v1515_v45, %v1467_v3  ;;  %1566 = vmatmul.bf16.gmra.mxu0 %v4158_v42  ;;  %1880 = vmatpush.bf16.msra.mxu3 %v2883_v32  ;;  %v3131_v32 = vor.u32 %v3425_v47, %v3128_v15  ;;  %v3448_v47 = vld [vmem:[#allocation6 + $0x3b8] sm:$0xf0]  ;;  %v3026_v15 = vld [vmem:[#allocation6 + $0x230] sm:$0xf] }
 0x131   : > { %1615 = vmatmul.bf16.gmra.mxu1 %v4005_v8  ;;  %v2871_v8 = vor.u32 %v3361_v34, %v2870_v54 }
 0x132   : > { %1664 = vmatmul.bf16.gmra.mxu2 %v4048_v20  ;;  %1785 = vmatpush.bf16.msra.mxu1 %v3131_v32 }
 0x133   : > { %1713 = vmatmul.bf16.gmra.mxu3 %v4051_v21 }
 0x134   : > { %1881 = vmatpush.bf16.msra.mxu3 %v2871_v8 }
 0x135   : > { %v1469_v60 = vpop.f32.mrf.mxu2  ;;  %v1373_v45 = vpop.f32.mrf.mxu0 }
 0x136   : > { %v1470_v17 = vadd.f32 %v1469_v60, %v1421_v14  ;;  %v1518_v3 = vpop.f32.mrf.mxu3  ;;  %v1422_v5 = vpop.f32.mrf.mxu1  ;;  %v2846_v60 = vld [vmem:[#allocation6 + $0xc8] sm:$0xf] }
 0x137   : > { %v1423_v2 = vadd.f32 %v1422_v5, %v1373_v45 }
 0x138   : > { %v4166_v26 = vadd.f32 %v1518_v3, %v1470_v17  ;;  %1882 = vmatpush.bf16.msra.mxu3 %v2859_v57  ;;  %v4170_v17 = vsel %vm511_vm3, %v523_v61, %v525_v41  ;;  %v2847_v3 = vor.u32 %v3355_v55, %v2846_v60  ;;  %v3400_v61 = vld [vmem:[#allocation6 + $0x238] sm:$0xf0] }
 0x139   : > { %v3027_v24 = vor.u32 %v3400_v61, %v3026_v15 }
 0x13b   : > { %1925 = vmatpush.bf16.msrb.mxu0 %v3027_v24 }
 0x13c   : > { %1883 = vmatpush.bf16.msra.mxu3 %v2847_v3 }
 0x13d   : > { %v1471_v14 = vpop.f32.mrf.mxu2  ;;  %v1376_v0 = vpop.f32.mrf.mxu0 }
 0x13e   : > { %v1472_v54 = vadd.f32 %v1471_v14, %v1423_v2  ;;  %v1520_v34 = vpop.f32.mrf.mxu3  ;;  %v1425_v45 = vpop.f32.mrf.mxu1  ;;  %v3218_v2 = vld [vmem:[#allocation6 + $0x3b0] sm:$0xf] }
 0x13f   : > { %v1426_v5 = vadd.f32 %v1425_v45, %v1376_v0  ;;  %v3219_v33 = vor.u32 %v3448_v47, %v3218_v2  ;;  %v3424_v0 = vld [vmem:[#allocation6 + $0x2f8] sm:$0xf0]  ;;  %v527_v45 = vrot.slane %v4075_v13, 2 }
 0x140   : > { %v4172_v8 = vadd.f32 %v1520_v34, %v1472_v54  ;;  %1571 = vmatmul.bf16.gmra.mxu0 %v4170_v17  ;;  %v3122_v34 = vld [vmem:[#allocation6 + $0x2f0] sm:$0xf] }
 0x141   : > { %1620 = vmatmul.bf16.gmra.mxu1 %v4024_v35  ;;  %2023 = vmatpush.bf16.msrb.mxu2 %v3219_v33  ;;  %v3123_v3 = vor.u32 %v3424_v0, %v3122_v34 }
 0x142   : > { %1669 = vmatmul.bf16.gmra.mxu2 %v4067_v6 }
 0x143   : > { %1718 = vmatmul.bf16.gmra.mxu3 %v4070_v7  ;;  %1974 = vmatpush.bf16.msrb.mxu1 %v3123_v3  ;;  %v3421_v3 = vld [vmem:[#allocation6 + $0x2e0] sm:$0xf0] }
 0x145   : > { %v1474_v32 = vpop.f32.mrf.mxu2  ;;  %v1378_v60 = vpop.f32.mrf.mxu0 }
 0x146   : > { %v1475_v57 = vadd.f32 %v1474_v32, %v1426_v5  ;;  %v1523_v14 = vpop.f32.mrf.mxu3  ;;  %v1427_v55 = vpop.f32.mrf.mxu1  ;;  %v4182_v5 = vsel %vm511_vm3, %v525_v41, %v527_v45  ;;  %v3014_v41 = vld [vmem:[#allocation6 + $0x218] sm:$0xf] }
 0x147   : > { %v1428_v35 = vadd.f32 %v1427_v55, %v1378_v60 }
 0x148   : > { %v4178_v54 = vadd.f32 %v1523_v14, %v1475_v57  ;;  %v3206_v57 = vld [vmem:[#allocation6 + $0x398] sm:$0xf]  ;;  %v3445_v14 = vld [vmem:[#allocation6 + $0x3a0] sm:$0xf0] }
 0x149   : > { %v3207_v55 = vor.u32 %v3445_v14, %v3206_v57 }
 0x14b   : > { %2024 = vmatpush.bf16.msrb.mxu2 %v3207_v55 }
 0x14d   : > { %v1476_v7 = vpop.f32.mrf.mxu2  ;;  %v1381_v21 = vpop.f32.mrf.mxu0 }
 0x14e   : > { %v1477_v2 = vadd.f32 %v1476_v7, %v1428_v35  ;;  %v1525_v47 = vpop.f32.mrf.mxu3  ;;  %v1430_v15 = vpop.f32.mrf.mxu1  ;;  %v3397_v35 = vld [vmem:[#allocation6 + $0x220] sm:$0xf0] }
 0x14f   : > { %v1431_v61 = vadd.f32 %v1430_v15, %v1381_v21  ;;  %v3015_v0 = vor.u32 %v3397_v35, %v3014_v41 }
 0x150   : > { %v4184_v33 = vadd.f32 %v1525_v47, %v1477_v2  ;;  %1576 = vmatmul.bf16.gmra.mxu0 %v4182_v5 }
 0x151   : > { %1625 = vmatmul.bf16.gmra.mxu1 %v4045_v19  ;;  %v3110_v19 = vld [vmem:[#allocation6 + $0x2d8] sm:$0xf]  ;;  %1926 = vmatpush.bf16.msrb.mxu0 %v3015_v0  ;;  %v3002_v0 = vld [vmem:[#allocation6 + $0x200] sm:$0xf] }
 0x152   : > { %1674 = vmatmul.bf16.gmra.mxu2 %v4085_v46  ;;  %v3111_v45 = vor.u32 %v3421_v3, %v3110_v19 }
 0x153   : > { %1723 = vmatmul.bf16.gmra.mxu3 %v4088_v51 }
 0x154   : > { %1975 = vmatpush.bf16.msrb.mxu1 %v3111_v45  ;;  %v3394_v45 = vld [vmem:[#allocation6 + $0x208] sm:$0xf0] }
 0x155   : > { %v1479_v13 = vpop.f32.mrf.mxu2  ;;  %v1383_v24 = vpop.f32.mrf.mxu0 }
 0x156   : > { %v1480_v32 = vadd.f32 %v1479_v13, %v1431_v61  ;;  %v1528_v7 = vpop.f32.mrf.mxu3  ;;  %v1432_v60 = vpop.f32.mrf.mxu1 }
 0x157   : > { %v1433_v21 = vadd.f32 %v1432_v60, %v1383_v24 }
 0x158   : > { %v4190_v34 = vadd.f32 %v1528_v7, %v1480_v32  ;;  %v3557_v32 = vld [vmem:[%s3917_s28] sm:$0xff] }
 0x15d   : > { %v1481_v2 = vpop.f32.mrf.mxu2  ;;  %v1542_v61 = vpop.f32.mrf.mxu0 }
 0x15e   : > { %v1482_v47 = vadd.f32 %v1481_v2, %v1433_v21  ;;  %v1530_v15 = vpop.f32.mrf.mxu3  ;;  %v1543_v13 = vadd.f32 %v1542_v61, %v4106_v40  ;;  %v1591_v51 = vpop.f32.mrf.mxu1  ;;  %v3194_v40 = vld [vmem:[#allocation6 + $0x380] sm:$0xf]  ;;  %v3442_v21 = vld [vmem:[#allocation6 + $0x388] sm:$0xf0] }
 0x15f   : > { %v3195_v3 = vor.u32 %v3442_v21, %v3194_v40  ;;  %v3098_v2 = vld [vmem:[#allocation6 + $0x2c0] sm:$0xf] }
 0x160   : > { %v4193_v57 = vadd.f32 %v1530_v15, %v1482_v47  ;;  %1737 = vmatmul.bf16.vlgmr.msra.gmra.mxu0 %v3955_v1  ;;  %v3003_v15 = vor.u32 %v3394_v45, %v3002_v0 }
 0x161   : > { %1786 = vmatmul.bf16.vlgmr.msra.gmra.mxu1 %v4100_v4  ;;  %2025 = vmatpush.bf16.msrb.mxu2 %v3195_v3 }
 0x162   : > { %1835 = vmatmul.bf16.vlgmr.msra.gmra.mxu2 %v3557_v32  ;;  %1927 = vmatpush.bf16.msrb.mxu0 %v3003_v15  ;;  %v3439_v15 = vld [vmem:[#allocation6 + $0x370] sm:$0xf0] }
 0x163   : > { %1884 = vmatmul.bf16.vlgmr.msra.gmra.mxu3 %v3949_v62  ;;  %v3418_v62 = vld [vmem:[#allocation6 + $0x2c8] sm:$0xf0] }
 0x165   : > { %v1640_v7 = vpop.f32.mrf.mxu2  ;;  %v1544_v41 = vpop.f32.mrf.mxu0 }
 0x166   : > { %v1641_v24 = vadd.f32 %v1640_v7, %v1591_v51  ;;  %v1689_v14 = vpop.f32.mrf.mxu3  ;;  %v1545_v60 = vadd.f32 %v1544_v41, %v4112_v58  ;;  %v1593_v55 = vpop.f32.mrf.mxu1  ;;  %v3099_v51 = vor.u32 %v3418_v62, %v3098_v2  ;;  %v3182_v2 = vld [vmem:[#allocation6 + $0x368] sm:$0xf] }
 0x167   : > { %v2990_v62 = vld [vmem:[#allocation6 + $0x1e8] sm:$0xf] }
 0x168   : > { %v4200_v35 = vadd.f32 %v1689_v14, %v1641_v24  ;;  %v2073_v19 = vsel %vm511_vm3, %v1545_v60, -inf  ;;  %1976 = vmatpush.bf16.msrb.mxu1 %v3099_v51 }
 0x169   : > { %v2074_v47 = vmax.f32 %v1543_v13, %v2073_v19  ;;  %v3558_v13 = vld [vmem:[%s3917_s28 + $0x8] sm:$0xff] }
 0x16b   : > { %v2075_v60 = vrot.slane %v2074_v47, 4 }
 0x16d   : > { %v1642_v61 = vpop.f32.mrf.mxu2  ;;  %v1547_v7 = vpop.f32.mrf.mxu0  ;;  %v2076_v21 = vmax.f32 %v2074_v47, %v2075_v60  ;;  %v3415_v47 = vld [vmem:[#allocation6 + $0x2b0] sm:$0xf0] }
 0x16e   : > { %v1643_v58 = vadd.f32 %v1642_v61, %v1593_v55  ;;  %v1691_v32 = vpop.f32.mrf.mxu3  ;;  %v1548_v24 = vadd.f32 %v1547_v7, %v4118_v30  ;;  %v1596_v14 = vpop.f32.mrf.mxu1  ;;  %v3183_v61 = vor.u32 %v3439_v15, %v3182_v2 }
 0x16f   : > { %v2077_v7 = vrot.slane %v2076_v21, 2 }
 0x170   : > { %v4204_v41 = vadd.f32 %v1691_v32, %v1643_v58  ;;  %1742 = vmatmul.bf16.gmra.mxu0 %v3976_v29  ;;  %v3391_v58 = vld [vmem:[#allocation6 + $0x1f0] sm:$0xf0]  ;;  %v3086_v32 = vld [vmem:[#allocation6 + $0x2a8] sm:$0xf]  ;;  %2026 = vmatpush.bf16.msrb.mxu2 %v3183_v61 }
 0x171   : > { %1791 = vmatmul.bf16.gmra.mxu1 %v4110_v56 }
 0x172   : > { %1840 = vmatmul.bf16.gmra.mxu2 %v3558_v13  ;;  %v2991_v13 = vor.u32 %v3391_v58, %v2990_v62 }
 0x173   : > { %1889 = vmatmul.bf16.gmra.mxu3 %v3970_v27 }
 0x174   : > { %1928 = vmatpush.bf16.msrb.mxu0 %v2991_v13 }
 0x175   : > { %v1645_v40 = vpop.f32.mrf.mxu2  ;;  %v1549_v19 = vpop.f32.mrf.mxu0 }
 0x176   : > { %v1646_v0 = vadd.f32 %v1645_v40, %v1596_v14  ;;  %v1694_v55 = vpop.f32.mrf.mxu3  ;;  %v1550_v3 = vadd.f32 %v1549_v19, %v4124_v53  ;;  %v1598_v30 = vpop.f32.mrf.mxu1  ;;  %v3087_v14 = vor.u32 %v3415_v47, %v3086_v32  ;;  %v2078_v40 = vmax.f32 %v2076_v21, %v2077_v7 }
 0x178   : > { %v4211_v45 = vadd.f32 %v1694_v55, %v1646_v0  ;;  %v2081_v51 = vsel %vm511_vm3, %v1550_v3, -inf  ;;  %1977 = vmatpush.bf16.msrb.mxu1 %v3087_v14  ;;  %v3170_v14 = vld [vmem:[#allocation6 + $0x350] sm:$0xf] }
 0x179   : > { %v2082_v27 = vmax.f32 %v1548_v24, %v2081_v51  ;;  %v2079_v24 = vrot.slane %v2078_v40, 1  ;;  %v3559_v51 = vld [vmem:[%s3917_s28 + $0x10] sm:$0xff] }
 0x17b   : > { %v2083_v60 = vrot.slane %v2082_v27, 4  ;;  %v2080_v61 = vmax.f32 %v2078_v40, %v2079_v24 }
 0x17d   : > { %v1647_v53 = vpop.f32.mrf.mxu2  ;;  %v2084_v0 = vmax.f32 %v2082_v27, %v2083_v60  ;;  %v1552_v37 = vpop.f32.mrf.mxu0  ;;  %v3436_v60 = vld [vmem:[#allocation6 + $0x358] sm:$0xf0] }
 0x17e   : > { %v1648_v55 = vadd.f32 %v1647_v53, %v1598_v30  ;;  %v1696_v19 = vpop.f32.mrf.mxu3  ;;  %v1553_v3 = vadd.f32 %v1552_v37, %v4130_v23  ;;  %v1601_v2 = vpop.f32.mrf.mxu1  ;;  %v2978_v53 = vld [vmem:[#allocation6 + $0x1d0] sm:$0xf] }
 0x17f   : > { %v2085_v15 = vrot.slane %v2084_v0, 2 }
 0x180   : > { %v4215_v10 = vadd.f32 %v1696_v19, %v1648_v55  ;;  %1747 = vmatmul.bf16.gmra.mxu0 %v3995_v50  ;;  %v3388_v55 = vld [vmem:[#allocation6 + $0x1d8] sm:$0xf0]  ;;  %v3074_v19 = vld [vmem:[#allocation6 + $0x290] sm:$0xf] }
 0x181   : > { %v2086_v62 = vmax.f32 %v2084_v0, %v2085_v15  ;;  %1796 = vmatmul.bf16.gmra.mxu1 %v4122_v44  ;;  %v3171_v0 = vor.u32 %v3436_v60, %v3170_v14  ;;  %v2979_v15 = vor.u32 %v3388_v55, %v2978_v53 }
 0x182   : > { %1845 = vmatmul.bf16.gmra.mxu2 %v3559_v51 }
 0x183   : > { %1894 = vmatmul.bf16.gmra.mxu3 %v3989_v48  ;;  %v2087_v21 = vrot.slane %v2086_v62, 1  ;;  %2027 = vmatpush.bf16.msrb.mxu2 %v3171_v0 }
 0x184   : > { %1929 = vmatpush.bf16.msrb.mxu0 %v2979_v15  ;;  %v3158_v15 = vld [vmem:[#allocation6 + $0x338] sm:$0xf] }
 0x185   : > { %v1650_v30 = vpop.f32.mrf.mxu2  ;;  %v2088_v58 = vmax.f32 %v2086_v62, %v2087_v21  ;;  %v1554_v32 = vpop.f32.mrf.mxu0 }
 0x186   : > { %v1651_v37 = vadd.f32 %v1650_v30, %v1601_v2  ;;  %v1699_v23 = vpop.f32.mrf.mxu3  ;;  %v1555_v7 = vadd.f32 %v1554_v32, %v4136_v43  ;;  %v1603_v27 = vpop.f32.mrf.mxu1  ;;  %v3412_v2 = vld [vmem:[#allocation6 + $0x298] sm:$0xf0] }
 0x187   : > { %v2276_v13 = vsel %vm2275_vm4, %v2088_v58, %v2080_v61  ;;  %v3075_v24 = vor.u32 %v3412_v2, %v3074_v19  ;;  %v3433_v2 = vld [vmem:[#allocation6 + $0x340] sm:$0xf0] }
 0x188   : > { %v4223_v47 = vadd.f32 %v1699_v23, %v1651_v37  ;;  %v2089_v48 = vsel %vm511_vm3, %v1555_v7, -inf  ;;  %v3560_v7 = vld [vmem:[%s3917_s28 + $0x18] sm:$0xff] }
 0x189   : > { %v2090_v40 = vmax.f32 %v1553_v3, %v2089_v48  ;;  %1978 = vmatpush.bf16.msrb.mxu1 %v3075_v24  ;;  %v2966_v24 = vld [vmem:[#allocation6 + $0x1b8] sm:$0xf] }
 0x18b   : > { %v2091_v43 = vrot.slane %v2090_v40, 4 }
 0x18d   : > { %v1652_v62 = vpop.f32.mrf.mxu2  ;;  %v2092_v51 = vmax.f32 %v2090_v40, %v2091_v43  ;;  %v1557_v61 = vpop.f32.mrf.mxu0 }
 0x18e   : > { %v1653_v21 = vadd.f32 %v1652_v62, %v1603_v27  ;;  %v1701_v30 = vpop.f32.mrf.mxu3  ;;  %v1558_v58 = vadd.f32 %v1557_v61, %v4142_v12  ;;  %v1606_v37 = vpop.f32.mrf.mxu1  ;;  %v3385_v62 = vld [vmem:[#allocation6 + $0x1c0] sm:$0xf0] }
 0x18f   : > { %v2093_v23 = vrot.slane %v2092_v51, 2  ;;  %v3409_v61 = vld [vmem:[#allocation6 + $0x280] sm:$0xf0] }
 0x190   : > { %v4227_v32 = vadd.f32 %v1701_v30, %v1653_v21  ;;  %1752 = vmatmul.bf16.gmra.mxu0 %v4014_v11  ;;  %v2967_v30 = vor.u32 %v3385_v62, %v2966_v24 }
 0x191   : > { %v2094_v3 = vmax.f32 %v2092_v51, %v2093_v23  ;;  %1801 = vmatmul.bf16.gmra.mxu1 %v4134_v16  ;;  %v3062_v51 = vld [vmem:[#allocation6 + $0x278] sm:$0xf] }
 0x192   : > { %1850 = vmatmul.bf16.gmra.mxu2 %v3560_v7  ;;  %1930 = vmatpush.bf16.msrb.mxu0 %v2967_v30  ;;  %v3146_v30 = vld [vmem:[#allocation6 + $0x320] sm:$0xf] }
 0x193   : > { %1899 = vmatmul.bf16.gmra.mxu3 %v4008_v9  ;;  %v2095_v14 = vrot.slane %v2094_v3, 1  ;;  %v3159_v9 = vor.u32 %v3433_v2, %v3158_v15 }
 0x195   : > { %v1655_v27 = vpop.f32.mrf.mxu2  ;;  %v2096_v60 = vmax.f32 %v2094_v3, %v2095_v14  ;;  %v1559_v12 = vpop.f32.mrf.mxu0  ;;  %2028 = vmatpush.bf16.msrb.mxu2 %v3159_v9 }
 0x196   : > { %v1656_v53 = vadd.f32 %v1655_v27, %v1606_v37  ;;  %v1704_v48 = vpop.f32.mrf.mxu3  ;;  %v1560_v0 = vadd.f32 %v1559_v12, %v4148_v25  ;;  %v1608_v55 = vpop.f32.mrf.mxu1  ;;  %v3063_v37 = vor.u32 %v3409_v61, %v3062_v51  ;;  %v3430_v61 = vld [vmem:[#allocation6 + $0x328] sm:$0xf0] }
 0x197   : > { %v2278_v19 = vsel %vm2277_vm5, %v2096_v60, %v2276_v13 }
 0x198   : > { %v4235_v40 = vadd.f32 %v1704_v48, %v1656_v53  ;;  %v2097_v43 = vsel %vm511_vm3, %v1560_v0, -inf  ;;  %1979 = vmatpush.bf16.msrb.mxu1 %v3063_v37  ;;  %v3561_v48 = vld [vmem:[%s3917_s28 + $0x20] sm:$0xff] }
 0x199   : > { %v2098_v21 = vmax.f32 %v1558_v58, %v2097_v43  ;;  %v2954_v37 = vld [vmem:[#allocation6 + $0x1a0] sm:$0xf] }
 0x19b   : > { %v2099_v25 = vrot.slane %v2098_v21, 4 }
 0x19d   : > { %v1657_v23 = vpop.f32.mrf.mxu2  ;;  %v2100_v13 = vmax.f32 %v2098_v21, %v2099_v25  ;;  %v1562_v14 = vpop.f32.mrf.mxu0  ;;  %v3147_v25 = vor.u32 %v3430_v61, %v3146_v30 }
 0x19e   : > { %v1658_v3 = vadd.f32 %v1657_v23, %v1608_v55  ;;  %v1706_v7 = vpop.f32.mrf.mxu3  ;;  %v1611_v27 = vpop.f32.mrf.mxu1  ;;  %v1563_v51 = vadd.f32 %v1562_v14, %v4154_v31  ;;  %v3382_v23 = vld [vmem:[#allocation6 + $0x1a8] sm:$0xf0] }
 0x19f   : > { %v2101_v60 = vrot.slane %v2100_v13, 2  ;;  %2029 = vmatpush.bf16.msrb.mxu2 %v3147_v25 }
 0x1a0   : > { %v4238_v53 = vadd.f32 %v1706_v7, %v1658_v3  ;;  %1757 = vmatmul.bf16.gmra.mxu0 %v4033_v38  ;;  %v2955_v7 = vor.u32 %v3382_v23, %v2954_v37 }
 0x1a1   : > { %v2102_v58 = vmax.f32 %v2100_v13, %v2101_v60  ;;  %1806 = vmatmul.bf16.gmra.mxu1 %v4146_v39  ;;  %v3050_v13 = vld [vmem:[#allocation6 + $0x260] sm:$0xf] }
 0x1a2   : > { %1855 = vmatmul.bf16.gmra.mxu2 %v3561_v48  ;;  %1931 = vmatpush.bf16.msrb.mxu0 %v2955_v7 }
 0x1a3   : > { %1904 = vmatmul.bf16.gmra.mxu3 %v4027_v36  ;;  %v2103_v12 = vrot.slane %v2102_v58, 1 }
 0x1a5   : > { %v1660_v0 = vpop.f32.mrf.mxu2  ;;  %v2104_v15 = vmax.f32 %v2102_v58, %v2103_v12  ;;  %v1564_v24 = vpop.f32.mrf.mxu0 }
 0x1a6   : > { %v1661_v55 = vadd.f32 %v1660_v0, %v1611_v27  ;;  %v1709_v2 = vpop.f32.mrf.mxu3  ;;  %v1565_v43 = vadd.f32 %v1564_v24, %v4160_v59  ;;  %v1613_v9 = vpop.f32.mrf.mxu1  ;;  %v3406_v27 = vld [vmem:[#allocation6 + $0x268] sm:$0xf0]  ;;  %v3562_v24 = vld [vmem:[%s3917_s28 + $0x28] sm:$0xff] }
 0x1a7   : > { %v2280_v62 = vsel %vm2279_vm6, %v2104_v15, %v2278_v19  ;;  %v3051_v59 = vor.u32 %v3406_v27, %v3050_v13  ;;  %v3134_v27 = vld [vmem:[#allocation6 + $0x308] sm:$0xf] }
 0x1a8   : > { %v4247_v21 = vadd.f32 %v1709_v2, %v1661_v55  ;;  %v2105_v36 = vsel %vm511_vm3, %v1565_v43, -inf  ;;  %v3456_v55 = vld [vmem:[#allocation9 + $0x38] sm:$0xff] }
 0x1a9   : > { %v2106_v3 = vmax.f32 %v1563_v51, %v2105_v36  ;;  %1980 = vmatpush.bf16.msrb.mxu1 %v3051_v59  ;;  %2541 = vmatpush.bf16.msrb.mxu3 %v3456_v55  ;;  %v3455_v51 = vld [vmem:[#allocation9 + $0x30] sm:$0xff]  ;;  %v2942_v59 = vld [vmem:[#allocation6 + $0x188] sm:$0xf] }
 0x1ab   : > { %v2107_v60 = vrot.slane %v2106_v3, 4 }
 0x1ad   : > { %v1662_v19 = vpop.f32.mrf.mxu2  ;;  %v2108_v31 = vmax.f32 %v2106_v3, %v2107_v60  ;;  %v1567_v48 = vpop.f32.mrf.mxu0  ;;  %2542 = vmatpush.bf16.msrb.mxu3 %v3455_v51 }
 0x1ae   : > { %v1663_v14 = vadd.f32 %v1662_v19, %v1613_v9  ;;  %v1711_v58 = vpop.f32.mrf.mxu3  ;;  %v1616_v12 = vpop.f32.mrf.mxu1  ;;  %v1568_v3 = vadd.f32 %v1567_v48, %v4166_v26  ;;  %v3453_v26 = vld [vmem:[#allocation9 + $0x20] sm:$0xff] }
 0x1af   : > { %v2109_v0 = vrot.slane %v2108_v31, 2 }
 0x1b0   : > { %v4250_v15 = vadd.f32 %v1711_v58, %v1663_v14  ;;  %1762 = vmatmul.bf16.gmra.mxu0 %v4054_v22  ;;  %v3038_v14 = vld [vmem:[#allocation6 + $0x248] sm:$0xf]  ;;  %v3454_v58 = vld [vmem:[#allocation9 + $0x28] sm:$0xff] }
 0x1b1   : > { %v2110_v2 = vmax.f32 %v2108_v31, %v2109_v0  ;;  %1811 = vmatmul.bf16.gmra.mxu1 %v4158_v42  ;;  %v3379_v31 = vld [vmem:[#allocation6 + $0x190] sm:$0xf0]  ;;  %2543 = vmatpush.bf16.msrb.mxu3 %v3454_v58 }
 0x1b2   : > { %1860 = vmatmul.bf16.gmra.mxu2 %v3562_v24  ;;  %v2943_v0 = vor.u32 %v3379_v31, %v2942_v59 }
 0x1b3   : > { %1909 = vmatmul.bf16.gmra.mxu3 %v4048_v20  ;;  %v2111_v43 = vrot.slane %v2110_v2, 1  ;;  %v3427_v20 = vld [vmem:[#allocation6 + $0x310] sm:$0xf0] }
 0x1b4   : > { %v3135_v19 = vor.u32 %v3427_v20, %v3134_v27  ;;  %1932 = vmatpush.bf16.msrb.mxu0 %v2943_v0 }
 0x1b5   : > { %v1665_v9 = vpop.f32.mrf.mxu2  ;;  %v2112_v30 = vmax.f32 %v2110_v2, %v2111_v43  ;;  %v1569_v36 = vpop.f32.mrf.mxu0  ;;  %2544 = vmatpush.bf16.msrb.mxu3 %v3453_v26 }
 0x1b6   : > { %v1666_v61 = vadd.f32 %v1665_v9, %v1616_v12  ;;  %v1714_v37 = vpop.f32.mrf.mxu3  ;;  %v1570_v25 = vadd.f32 %v1569_v36, %v4172_v8  ;;  %v1618_v23 = vpop.f32.mrf.mxu1  ;;  %v3403_v8 = vld [vmem:[#allocation6 + $0x250] sm:$0xf0]  ;;  %2030 = vmatpush.bf16.msrb.mxu2 %v3135_v19  ;;  %v3563_v36 = vld [vmem:[%s3917_s28 + $0x30] sm:$0xff] }
 0x1b7   : > { %v2282_v13 = vsel %vm2281_vm7, %v2112_v30, %v2280_v62  ;;  %v3039_v55 = vor.u32 %v3403_v8, %v3038_v14 }
 0x1b8   : > { %v4259_v7 = vadd.f32 %v1714_v37, %v1666_v61  ;;  %v2113_v60 = vsel %vm511_vm3, %v1570_v25, -inf  ;;  %v3452_v61 = vld [vmem:[#allocation9 + $0x18] sm:$0xff] }
 0x1b9   : > { %v2114_v12 = vmax.f32 %v1568_v3, %v2113_v60  ;;  %1981 = vmatpush.bf16.msrb.mxu1 %v3039_v55  ;;  %2545 = vmatpush.bf16.msrb.mxu3 %v3452_v61 }
 0x1bb   : > { %v2115_v62 = vrot.slane %v2114_v12, 4 }
 0x1bd   : > { %v1667_v48 = vpop.f32.mrf.mxu2  ;;  %v2116_v2 = vmax.f32 %v2114_v12, %v2115_v62  ;;  %v1572_v51 = vpop.f32.mrf.mxu0  ;;  %v3449_v62 = vld [vmem:[#allocation9] sm:$0xff] }
 0x1be   : > { %v4262_v24 = vadd.f32 %v1667_v48, %v1618_v23  ;;  %v4264_v43 = vpop.f32.mrf.mxu3  ;;  %v1621_v9 = vpop.f32.mrf.mxu1  ;;  %v3451_v23 = vld [vmem:[#allocation9 + $0x10] sm:$0xff]  ;;  %v1573_v58 = vadd.f32 %v1572_v51, %v4178_v54 }
 0x1bf   : > { %v2117_v30 = vrot.slane %v2116_v2, 2  ;;  %2546 = vmatpush.bf16.msrb.mxu3 %v3451_v23 }
 0x1c0   : > { %1767 = vmatmul.bf16.gmra.mxu0 %v4073_v18 }
 0x1c1   : > { %v2118_v37 = vmax.f32 %v2116_v2, %v2117_v30  ;;  %1816 = vmatmul.bf16.gmra.mxu1 %v4170_v17  ;;  %v3564_v30 = vld [vmem:[%s3917_s28 + $0x38] sm:$0xff] }
 0x1c2   : > { %1865 = vmatmul.bf16.gmra.mxu2 %v3563_v36 }
 0x1c3   : > { %1914 = vmatmul.bf16.gmra.mxu3 %v4067_v6  ;;  %v2119_v25 = vrot.slane %v2118_v37, 1  ;;  %v3450_v6 = vld [vmem:[#allocation9 + $0x8] sm:$0xff] }
 0x1c4   : > { %2547 = vmatpush.bf16.msrb.mxu3 %v3450_v6 }
 0x1c5   : > { %v1670_v3 = vpop.f32.mrf.mxu2  ;;  %v2120_v27 = vmax.f32 %v2118_v37, %v2119_v25  ;;  %v1574_v60 = vpop.f32.mrf.mxu0 }
 0x1c6   : > { %v1671_v20 = vadd.f32 %v1670_v3, %v1621_v9  ;;  %v1719_v59 = vpop.f32.mrf.mxu3  ;;  %v1575_v19 = vadd.f32 %v1574_v60, %v4184_v33  ;;  %v1623_v31 = vpop.f32.mrf.mxu1 }
 0x1c7   : > { %v2284_v14 = vsel %vm2283_vm8, %v2120_v27, %v2282_v13 }
 0x1c8   : > { %v4273_v12 = vadd.f32 %v1719_v59, %v1671_v20  ;;  %v2121_v0 = vsel %vm511_vm3, %v1575_v19, -inf  ;;  %2548 = vmatpush.bf16.msrb.mxu3 %v3449_v62 }
 0x1c9   : > { %v2122_v8 = vmax.f32 %v1573_v58, %v2121_v0 }
 0x1cb   : > { %v2123_v55 = vrot.slane %v2122_v8, 4 }
 0x1cd   : > { %v1672_v26 = vpop.f32.mrf.mxu2  ;;  %v2124_v48 = vmax.f32 %v2122_v8, %v2123_v55  ;;  %v1577_v13 = vpop.f32.mrf.mxu0 }
 0x1ce   : > { %v4276_v2 = vadd.f32 %v1672_v26, %v1623_v31  ;;  %v4278_v33 = vpop.f32.mrf.mxu3  ;;  %v1626_v9 = vpop.f32.mrf.mxu1  ;;  %v1578_v60 = vadd.f32 %v1577_v13, %v4190_v34  ;;  %v4296_v13 = vld [vmem:[#allocation8] sm:$0x7] }
 0x1cf   : > { %v2125_v54 = vrot.slane %v2124_v48, 2 }
 0x1d0   : > { %1772 = vmatmul.bf16.gmra.mxu0 %v4091_v52 }
 0x1d1   : > { %v2126_v51 = vmax.f32 %v2124_v48, %v2125_v54  ;;  %1821 = vmatmul.bf16.gmra.mxu1 %v4182_v5 }
 0x1d2   : > { %1870 = vmatmul.bf16.gmra.mxu2 %v3564_v30  ;;  %v2330_v30 = vperm.slane %v4296_v13, 0 }
 0x1d3   : > { %1919 = vmatmul.bf16.gmra.mxu3 %v4085_v46  ;;  %v2127_v61 = vrot.slane %v2126_v51, 1 }
 0x1d5   : > { %v1675_v37 = vpop.f32.mrf.mxu2  ;;  %v2128_v36 = vmax.f32 %v2126_v51, %v2127_v61  ;;  %v1579_v3 = vpop.f32.mrf.mxu0 }
 0x1d6   : > { %v1676_v25 = vadd.f32 %v1675_v37, %v1626_v9  ;;  %v1724_v23 = vpop.f32.mrf.mxu3  ;;  %v1580_v27 = vadd.f32 %v1579_v3, %v4193_v57  ;;  %v1628_v20 = vpop.f32.mrf.mxu1 }
 0x1d7   : > { %v2286_v59 = vsel %vm2285_vm9, %v2128_v36, %v2284_v14 }
 0x1d8   : > { %v4287_v19 = vadd.f32 %v1724_v23, %v1676_v25  ;;  %v2129_v31 = vsel %vm511_vm3, %v1580_v27, -inf }
 0x1d9   : > { %v2130_v58 = vmax.f32 %v1578_v60, %v2129_v31 }
 0x1db   : > { %v2131_v46 = vrot.slane %v2130_v58, 4 }
 0x1dd   : > { %v1677_v6 = vpop.f32.mrf.mxu2  ;;  %v2132_v0 = vmax.f32 %v2130_v58, %v2131_v46  ;;  %v1738_v62 = vpop.f32.mrf.mxu0 }
 0x1de   : > { %v1678_v8 = vadd.f32 %v1677_v6, %v1628_v20  ;;  %v1726_v55 = vpop.f32.mrf.mxu3  ;;  %v1739_v26 = vadd.f32 %v1738_v62, %v4200_v35  ;;  %v1787_v48 = vpop.f32.mrf.mxu1 }
 0x1df   : > { %v2133_v57 = vrot.slane %v2132_v0, 2 }
 0x1e0   : > { %v4291_v9 = vadd.f32 %v1726_v55, %v1678_v8  ;;  %v1788_v14 = vadd.f32 %v1787_v48, %v1739_v26  ;;  %1933 = vmatmul.bf16.vlgmr.msrb.gmra.mxu0 %v3952_v63 }
 0x1e1   : > { %v2134_v34 = vmax.f32 %v2132_v0, %v2133_v57  ;;  %1982 = vmatmul.bf16.vlgmr.msrb.gmra.mxu1 %v3955_v1 }
 0x1e2   : > { %2031 = vmatmul.bf16.vlgmr.msrb.gmra.mxu2 %v4100_v4 }
 0x1e3   : > { %v2135_v54 = vrot.slane %v2134_v34, 1 }
 0x1e5   : > { %v1836_v51 = vpop.f32.mrf.mxu2  ;;  %v2136_v35 = vmax.f32 %v2134_v34, %v2135_v54  ;;  %v1740_v37 = vpop.f32.mrf.mxu0 }
 0x1e6   : > { %v1885_v61 = vpop.f32.mrf.mxu3  ;;  %v1741_v25 = vadd.f32 %v1740_v37, %v4204_v41  ;;  %v1789_v63 = vpop.f32.mrf.mxu1 }
 0x1e7   : > { %v4299_v36 = vadd.f32 %v1885_v61, %v1836_v51  ;;  %v2288_v1 = vsel %vm2287_vm10, %v2136_v35, %v2286_v59 }
 0x1e8   : > { %v1790_v23 = vadd.f32 %v1789_v63, %v1741_v25  ;;  %v2336_v4 = vadd.f32 %v2330_v30, %v2288_v1 }
 0x1ea   : > { %v2138_v3 = vsel %vm2137_vm11, %v1790_v23, -inf  ;;  %v2339_v27 = vmax.f32 %v2336_v4, 0.0 }
 0x1eb   : > { %v2139_v20 = vmax.f32 %v1788_v14, %v2138_v3 }
 0x1ec   : > { %v2342_v31 = vpack.c.bf16 %v2339_v27, %v2339_v27 }
 0x1ed   : > { %v1838_v60 = vpop.f32.mrf.mxu2  ;;  %v1743_v46 = vpop.f32.mrf.mxu0  ;;  %v2140_v59 = vrot.slane %v2139_v20, 4 }
 0x1ee   : > { %v1887_v58 = vpop.f32.mrf.mxu3  ;;  %v1744_v0 = vadd.f32 %v1743_v46, %v4211_v45  ;;  %v1792_v8 = vpop.f32.mrf.mxu1  ;;  %2549 = vmatmul.bf16.vlgmr.msrb.gmra.mxu3 %v2342_v31 }
 0x1ef   : > { %v4304_v6 = vadd.f32 %v1887_v58, %v1838_v60  ;;  %v2141_v34 = vmax.f32 %v2139_v20, %v2140_v59 }
 0x1f0   : > { %v1793_v41 = vadd.f32 %v1792_v8, %v1744_v0  ;;  %1938 = vmatmul.bf16.gmra.mxu0 %v3973_v28 }
 0x1f1   : > { %1987 = vmatmul.bf16.gmra.mxu1 %v3976_v29  ;;  %v2142_v51 = vrot.slane %v2141_v34, 2 }
 0x1f2   : > { %2036 = vmatmul.bf16.gmra.mxu2 %v4110_v56 }
 0x1f3   : > { %v2143_v63 = vmax.f32 %v2141_v34, %v2142_v51 }
 0x1f5   : > { %v1841_v55 = vpop.f32.mrf.mxu2  ;;  %v1745_v26 = vpop.f32.mrf.mxu0  ;;  %v2144_v4 = vrot.slane %v2143_v63, 1 }
 0x1f6   : > { %v1890_v62 = vpop.f32.mrf.mxu3  ;;  %v1746_v57 = vadd.f32 %v1745_v26, %v4215_v10  ;;  %v1794_v14 = vpop.f32.mrf.mxu1 }
 0x1f7   : > { %v4310_v48 = vadd.f32 %v1890_v62, %v1841_v55  ;;  %v2145_v0 = vmax.f32 %v2143_v63, %v2144_v4 }
 0x1f8   : > { %v1795_v45 = vadd.f32 %v1794_v14, %v1746_v57 }
 0x1fa   : > { %v2146_v54 = vsel %vm2137_vm11, %v1795_v45, -inf }
 0x1fb   : > { %v2147_v30 = vmax.f32 %v1793_v41, %v2146_v54  ;;  %v4486_v54 = vld [vmem:[#allocation16_spill] sm:$0xff] }
 0x1fd   : > { %v1843_v28 = vpop.f32.mrf.mxu2  ;;  %v2148_v35 = vrot.slane %v2147_v30, 4  ;;  %v1748_v61 = vpop.f32.mrf.mxu0 }
 0x1fe   : > { %v1892_v29 = vpop.f32.mrf.mxu3  ;;  %v1749_v37 = vadd.f32 %v1748_v61, %v4223_v47  ;;  %v1797_v25 = vpop.f32.mrf.mxu1 }
 0x1ff   : > { %v4314_v56 = vadd.f32 %v1892_v29, %v1843_v28  ;;  %v2149_v1 = vmax.f32 %v2147_v30, %v2148_v35 }
 0x200   : > { %v1798_v23 = vadd.f32 %v1797_v25, %v1749_v37  ;;  %1943 = vmatmul.bf16.gmra.mxu0 %v3992_v49 }
 0x201   : > { %v2150_v10 = vrot.slane %v2149_v1, 2  ;;  %1992 = vmatmul.bf16.gmra.mxu1 %v3995_v50 }
 0x202   : > { %2041 = vmatmul.bf16.gmra.mxu2 %v4122_v44 }
 0x203   : > { %v2151_v3 = vmax.f32 %v2149_v1, %v2150_v10 }
 0x205   : > { %v1846_v27 = vpop.f32.mrf.mxu2  ;;  %v2152_v20 = vrot.slane %v2151_v3, 1  ;;  %v1750_v31 = vpop.f32.mrf.mxu0 }
 0x206   : > { %v1895_v60 = vpop.f32.mrf.mxu3  ;;  %v1751_v47 = vadd.f32 %v1750_v31, %v4227_v32  ;;  %v1799_v46 = vpop.f32.mrf.mxu1 }
 0x207   : > { %v4320_v58 = vadd.f32 %v1895_v60, %v1846_v27  ;;  %v2153_v8 = vmax.f32 %v2151_v3, %v2152_v20 }
 0x208   : > { %v1800_v41 = vadd.f32 %v1799_v46, %v1751_v47  ;;  %v4487_v47 = vld [vmem:[#allocation17_spill] sm:$0xff] }
 0x209   : > { %v2298_v49 = vsel %vm2275_vm4, %v2153_v8, %v2145_v0 }
 0x20a   : > { %v2154_v50 = vsel %vm2137_vm11, %v1800_v41, -inf }
 0x20b   : > { %v2155_v59 = vmax.f32 %v1798_v23, %v2154_v50 }
 0x20d   : > { %v1848_v44 = vpop.f32.mrf.mxu2  ;;  %v2156_v55 = vrot.slane %v2155_v59, 4  ;;  %v1753_v26 = vpop.f32.mrf.mxu0 }
 0x20e   : > { %v1897_v62 = vpop.f32.mrf.mxu3  ;;  %v1754_v14 = vadd.f32 %v1753_v26, %v4235_v40  ;;  %v1802_v34 = vpop.f32.mrf.mxu1 }
 0x20f   : > { %v4325_v57 = vadd.f32 %v1897_v62, %v1848_v44  ;;  %v2157_v45 = vmax.f32 %v2155_v59, %v2156_v55 }
 0x210   : > { %v1803_v32 = vadd.f32 %v1802_v34, %v1754_v14  ;;  %1948 = vmatmul.bf16.gmra.mxu0 %v4486_v54 }
 0x211   : > { %v2158_v51 = vrot.slane %v2157_v45, 2  ;;  %1997 = vmatmul.bf16.gmra.mxu1 %v4014_v11 }
 0x212   : > { %2046 = vmatmul.bf16.gmra.mxu2 %v4134_v16 }
 0x213   : > { %v2159_v30 = vmax.f32 %v2157_v45, %v2158_v51 }
 0x215   : > { %v1851_v28 = vpop.f32.mrf.mxu2  ;;  %v2160_v35 = vrot.slane %v2159_v30, 1  ;;  %v1755_v61 = vpop.f32.mrf.mxu0 }
 0x216   : > { %v1900_v29 = vpop.f32.mrf.mxu3  ;;  %v1756_v25 = vadd.f32 %v1755_v61, %v4238_v53  ;;  %v1804_v40 = vpop.f32.mrf.mxu1 }
 0x217   : > { %v4331_v37 = vadd.f32 %v1900_v29, %v1851_v28  ;;  %v2161_v63 = vmax.f32 %v2159_v30, %v2160_v35  ;;  %v4488_v35 = vld [vmem:[#allocation18_spill] sm:$0xff]  ;;  %v3464_v29 = vld [vmem:[#allocation9 + $0x78] sm:$0xff] }
 0x218   : > { %v1805_v1 = vadd.f32 %v1804_v40, %v1756_v25  ;;  %2554 = vmatpush.bf16.msra.mxu3 %v3464_v29  ;;  %v1717_v25 = vadd.f32 %v4264_v43, %v4262_v24 }
 0x219   : > { %v2299_v23 = vsel %vm2277_vm5, %v2161_v63, %v2298_v49 }
 0x21a   : > { %v2162_v10 = vsel %vm2137_vm11, %v1805_v1, -inf }
 0x21b   : > { %v2163_v4 = vmax.f32 %v1803_v32, %v2162_v10 }
 0x21d   : > { %v1853_v11 = vpop.f32.mrf.mxu2  ;;  %v2164_v3 = vrot.slane %v2163_v4, 4  ;;  %v1758_v27 = vpop.f32.mrf.mxu0 }
 0x21e   : > { %v1902_v16 = vpop.f32.mrf.mxu3  ;;  %v1807_v60 = vpop.f32.mrf.mxu1  ;;  %v1759_v41 = vadd.f32 %v1758_v27, %v4247_v21 }
 0x21f   : > { %v4336_v20 = vadd.f32 %v1902_v16, %v1853_v11  ;;  %v2165_v31 = vmax.f32 %v2163_v4, %v2164_v3  ;;  %v3463_v4 = vld [vmem:[#allocation9 + $0x70] sm:$0xff] }
 0x220   : > { %1953 = vmatmul.bf16.gmra.mxu0 %v4487_v47  ;;  %v1808_v34 = vadd.f32 %v1807_v60, %v1759_v41  ;;  %2555 = vmatpush.bf16.msra.mxu3 %v3463_v4 }
 0x221   : > { %v2166_v46 = vrot.slane %v2165_v31, 2  ;;  %2002 = vmatmul.bf16.gmra.mxu1 %v4033_v38 }
 0x222   : > { %2051 = vmatmul.bf16.gmra.mxu2 %v4146_v39 }
 0x223   : > { %v2167_v53 = vmax.f32 %v2165_v31, %v2166_v46  ;;  %v3462_v31 = vld [vmem:[#allocation9 + $0x68] sm:$0xff] }
 0x224   : > { %2556 = vmatpush.bf16.msra.mxu3 %v3462_v31 }
 0x225   : > { %v1856_v0 = vpop.f32.mrf.mxu2  ;;  %v2168_v8 = vrot.slane %v2167_v53, 1  ;;  %v1760_v50 = vpop.f32.mrf.mxu0 }
 0x226   : > { %v1905_v49 = vpop.f32.mrf.mxu3  ;;  %v1761_v44 = vadd.f32 %v1760_v50, %v4250_v15  ;;  %v1809_v55 = vpop.f32.mrf.mxu1  ;;  %v4489_v50 = vld [vmem:[#allocation19_spill] sm:$0xff] }
 0x227   : > { %v4342_v59 = vadd.f32 %v1905_v49, %v1856_v0  ;;  %v2169_v62 = vmax.f32 %v2167_v53, %v2168_v8  ;;  %v3461_v0 = vld [vmem:[#allocation9 + $0x60] sm:$0xff] }
 0x228   : > { %v1810_v26 = vadd.f32 %v1809_v55, %v1761_v44  ;;  %2557 = vmatpush.bf16.msra.mxu3 %v3461_v0  ;;  %v3460_v55 = vld [vmem:[#allocation9 + $0x58] sm:$0xff] }
 0x229   : > { %v2300_v14 = vsel %vm2279_vm6, %v2169_v62, %v2299_v23 }
 0x22a   : > { %v2170_v38 = vsel %vm2137_vm11, %v1810_v26, -inf  ;;  %v1722_v26 = vadd.f32 %v4278_v33, %v4276_v2 }
 0x22b   : > { %v2171_v39 = vmax.f32 %v1808_v34, %v2170_v38 }
 0x22c   : > { %2558 = vmatpush.bf16.msra.mxu3 %v3460_v55 }
 0x22d   : > { %v1858_v45 = vpop.f32.mrf.mxu2  ;;  %v2172_v32 = vrot.slane %v2171_v39, 4  ;;  %v1763_v51 = vpop.f32.mrf.mxu0 }
 0x22e   : > { %v1907_v54 = vpop.f32.mrf.mxu3  ;;  %v1812_v30 = vpop.f32.mrf.mxu1  ;;  %v1764_v1 = vadd.f32 %v1763_v51, %v4259_v7 }
 0x22f   : > { %v4347_v21 = vadd.f32 %v1907_v54, %v1858_v45  ;;  %v2173_v28 = vmax.f32 %v2171_v39, %v2172_v32  ;;  %v3459_v32 = vld [vmem:[#allocation9 + $0x50] sm:$0xff] }
 0x230   : > { %1958 = vmatmul.bf16.gmra.mxu0 %v4488_v35  ;;  %v1813_v60 = vadd.f32 %v1812_v30, %v1764_v1  ;;  %2559 = vmatpush.bf16.msra.mxu3 %v3459_v32 }
 0x231   : > { %v2174_v15 = vrot.slane %v2173_v28, 2  ;;  %2007 = vmatmul.bf16.gmra.mxu1 %v4054_v22 }
 0x232   : > { %2056 = vmatmul.bf16.gmra.mxu2 %v4158_v42 }
 0x233   : > { %v2175_v61 = vmax.f32 %v2173_v28, %v2174_v15  ;;  %v3458_v28 = vld [vmem:[#allocation9 + $0x48] sm:$0xff] }
 0x234   : > { %2560 = vmatpush.bf16.msra.mxu3 %v3458_v28 }
 0x235   : > { %v1861_v40 = vpop.f32.mrf.mxu2  ;;  %v2176_v63 = vrot.slane %v2175_v61, 1  ;;  %v1765_v10 = vpop.f32.mrf.mxu0 }
 0x236   : > { %v1910_v23 = vpop.f32.mrf.mxu3  ;;  %v1766_v3 = vadd.f32 %v1765_v10, %v1717_v25  ;;  %v1814_v16 = vpop.f32.mrf.mxu1  ;;  %v4490_v10 = vld [vmem:[#allocation20_spill] sm:$0xff] }
 0x237   : > { %v4355_v11 = vadd.f32 %v1910_v23, %v1861_v40  ;;  %v2177_v22 = vmax.f32 %v2175_v61, %v2176_v63  ;;  %v3457_v40 = vld [vmem:[#allocation9 + $0x40] sm:$0xff] }
 0x238   : > { %v1815_v42 = vadd.f32 %v1814_v16, %v1766_v3  ;;  %2561 = vmatpush.bf16.msra.mxu3 %v3457_v40 }
 0x239   : > { %v2301_v27 = vsel %vm2281_vm7, %v2177_v22, %v2300_v14 }
 0x23a   : > { %v2178_v24 = vsel %vm2137_vm11, %v1815_v42, -inf }
 0x23b   : > { %v2179_v43 = vmax.f32 %v1813_v60, %v2178_v24 }
 0x23d   : > { %v1863_v47 = vpop.f32.mrf.mxu2  ;;  %v2180_v7 = vrot.slane %v2179_v43, 4  ;;  %v1768_v53 = vpop.f32.mrf.mxu0 }
 0x23e   : > { %v1912_v46 = vpop.f32.mrf.mxu3  ;;  %v1817_v41 = vpop.f32.mrf.mxu1  ;;  %v1769_v38 = vadd.f32 %v1768_v53, %v4273_v12 }
 0x23f   : > { %v4359_v8 = vadd.f32 %v1912_v46, %v1863_v47  ;;  %v2181_v49 = vmax.f32 %v2179_v43, %v2180_v7 }
 0x240   : > { %1963 = vmatmul.bf16.gmra.mxu0 %v4489_v50  ;;  %v1818_v15 = vadd.f32 %v1817_v41, %v1769_v38 }
 0x241   : > { %v2182_v44 = vrot.slane %v2181_v49, 2  ;;  %2012 = vmatmul.bf16.gmra.mxu1 %v4073_v18 }
 0x242   : > { %2061 = vmatmul.bf16.gmra.mxu2 %v4170_v17 }
 0x243   : > { %v2183_v62 = vmax.f32 %v2181_v49, %v2182_v44 }
 0x245   : > { %v1866_v14 = vpop.f32.mrf.mxu2  ;;  %v2184_v34 = vrot.slane %v2183_v62, 1  ;;  %v1770_v45 = vpop.f32.mrf.mxu0 }
 0x246   : > { %v1915_v39 = vpop.f32.mrf.mxu3  ;;  %v1771_v51 = vadd.f32 %v1770_v45, %v1722_v26  ;;  %v1819_v30 = vpop.f32.mrf.mxu1 }
 0x247   : > { %v4367_v54 = vadd.f32 %v1915_v39, %v1866_v14  ;;  %v2185_v18 = vmax.f32 %v2183_v62, %v2184_v34 }
 0x248   : > { %v1820_v17 = vadd.f32 %v1819_v30, %v1771_v51  ;;  %v2331_v30 = vperm.slane %v4296_v13, 1 }
 0x249   : > { %v2302_v35 = vsel %vm2283_vm8, %v2185_v18, %v2301_v27 }
 0x24a   : > { %v2186_v2 = vsel %vm2137_vm11, %v1820_v17, -inf }
 0x24b   : > { %v2187_v33 = vmax.f32 %v1818_v15, %v2186_v2 }
 0x24d   : > { %v1868_v29 = vpop.f32.mrf.mxu2  ;;  %v2188_v12 = vrot.slane %v2187_v33, 4  ;;  %v1773_v25 = vpop.f32.mrf.mxu0 }
 0x24e   : > { %v1917_v61 = vpop.f32.mrf.mxu3  ;;  %v1822_v1 = vpop.f32.mrf.mxu1  ;;  %v1774_v42 = vadd.f32 %v1773_v25, %v4287_v19 }
 0x24f   : > { %v4371_v63 = vadd.f32 %v1917_v61, %v1868_v29  ;;  %v2189_v23 = vmax.f32 %v2187_v33, %v2188_v12 }
 0x250   : > { %1968 = vmatmul.bf16.gmra.mxu0 %v4490_v10  ;;  %v1823_v53 = vadd.f32 %v1822_v1, %v1774_v42 }
 0x251   : > { %v2190_v4 = vrot.slane %v2189_v23, 2  ;;  %2017 = vmatmul.bf16.gmra.mxu1 %v4091_v52 }
 0x252   : > { %2066 = vmatmul.bf16.gmra.mxu2 %v4182_v5 }
 0x253   : > { %v2191_v3 = vmax.f32 %v2189_v23, %v2190_v4 }
 0x255   : > { %v1871_v16 = vpop.f32.mrf.mxu2  ;;  %v2192_v22 = vrot.slane %v2191_v3, 1  ;;  %v1775_v60 = vpop.f32.mrf.mxu0 }
 0x256   : > { %v1920_v27 = vpop.f32.mrf.mxu3  ;;  %v1776_v24 = vadd.f32 %v1775_v60, %v4291_v9  ;;  %v1824_v43 = vpop.f32.mrf.mxu1 }
 0x257   : > { %v4377_v31 = vadd.f32 %v1920_v27, %v1871_v16  ;;  %v2193_v47 = vmax.f32 %v2191_v3, %v2192_v22 }
 0x258   : > { %v1825_v7 = vadd.f32 %v1824_v43, %v1776_v24 }
 0x259   : > { %v2303_v46 = vsel %vm2285_vm9, %v2193_v47, %v2302_v35 }
 0x25a   : > { %v2194_v52 = vsel %vm2137_vm11, %v1825_v7, -inf }
 0x25b   : > { %v2195_v5 = vmax.f32 %v1823_v53, %v2194_v52 }
 0x25d   : > { %v1873_v0 = vpop.f32.mrf.mxu2  ;;  %v2196_v41 = vrot.slane %v2195_v5, 4  ;;  %v1934_v50 = vpop.f32.mrf.mxu0 }
 0x25e   : > { %v1922_v49 = vpop.f32.mrf.mxu3  ;;  %v1935_v44 = vadd.f32 %v1934_v50, %v4299_v36  ;;  %v1983_v55 = vpop.f32.mrf.mxu1 }
 0x25f   : > { %v4382_v19 = vadd.f32 %v1922_v49, %v1873_v0  ;;  %v2197_v62 = vmax.f32 %v2195_v5, %v2196_v41 }
 0x260   : > { %v1984_v9 = vadd.f32 %v1983_v55, %v1935_v44 }
 0x261   : > { %v2198_v26 = vrot.slane %v2197_v62, 2 }
 0x263   : > { %v2199_v14 = vmax.f32 %v2197_v62, %v2198_v26 }
 0x265   : > { %v2032_v34 = vpop.f32.mrf.mxu2  ;;  %v2200_v38 = vrot.slane %v2199_v14, 1  ;;  %v1936_v45 = vpop.f32.mrf.mxu0 }
 0x266   : > { %v2033_v39 = vadd.f32 %v2032_v34, %v1984_v9  ;;  %v1937_v32 = vadd.f32 %v1936_v45, %v4304_v6  ;;  %v1985_v51 = vpop.f32.mrf.mxu1 }
 0x267   : > { %v2201_v18 = vmax.f32 %v2199_v14, %v2200_v38 }
 0x268   : > { %v1986_v17 = vadd.f32 %v1985_v51, %v1937_v32 }
 0x269   : > { %v2304_v28 = vsel %vm2287_vm10, %v2201_v18, %v2303_v46 }
 0x26a   : > { %v2337_v35 = vadd.f32 %v2331_v30, %v2304_v28 }
 0x26c   : > { %v2340_v15 = vmax.f32 %v2337_v35, 0.0 }
 0x26d   : > { %v2034_v36 = vpop.f32.mrf.mxu2  ;;  %v1939_v33 = vpop.f32.mrf.mxu0 }
 0x26e   : > { %v2035_v2 = vadd.f32 %v2034_v36, %v1986_v17  ;;  %v1940_v29 = vadd.f32 %v1939_v33, %v4310_v48  ;;  %v1988_v12 = vpop.f32.mrf.mxu1  ;;  %v2343_v61 = vpack.c.bf16 %v2340_v15, %v2340_v15 }
 0x270   : > { %v2203_v25 = vsel %vm2202_vm12, %v2035_v2, -inf  ;;  %v1989_v40 = vadd.f32 %v1988_v12, %v1940_v29  ;;  %2562 = vmatmul.bf16.vlgmr.msra.gmra.mxu3 %v2343_v61 }
 0x271   : > { %v2204_v6 = vmax.f32 %v2033_v39, %v2203_v25  ;;  %v4390_v1 = vpop.f32.mrf.mxu3 }
 0x273   : > { %v2205_v22 = vrot.slane %v2204_v6, 4 }
 0x275   : > { %v2037_v23 = vpop.f32.mrf.mxu2  ;;  %v1941_v4 = vpop.f32.mrf.mxu0  ;;  %v2206_v60 = vmax.f32 %v2204_v6, %v2205_v22 }
 0x276   : > { %v2038_v10 = vadd.f32 %v2037_v23, %v1989_v40  ;;  %v1942_v3 = vadd.f32 %v1941_v4, %v4314_v56  ;;  %v1990_v16 = vpop.f32.mrf.mxu1 }
 0x277   : > { %v2207_v53 = vrot.slane %v2206_v60, 2 }
 0x278   : > { %v1991_v42 = vadd.f32 %v1990_v16, %v1942_v3 }
 0x279   : > { %v2552_v27 = vpop.f32.mrf.mxu3  ;;  %v2208_v41 = vmax.f32 %v2206_v60, %v2207_v53 }
 0x27b   : > { %v2209_v26 = vrot.slane %v2208_v41, 1 }
 0x27d   : > { %v2039_v48 = vpop.f32.mrf.mxu2  ;;  %v1944_v43 = vpop.f32.mrf.mxu0  ;;  %v2210_v38 = vmax.f32 %v2208_v41, %v2209_v26 }
 0x27e   : > { %v2040_v24 = vadd.f32 %v2039_v48, %v1991_v42  ;;  %v1945_v47 = vadd.f32 %v1944_v43, %v4320_v58  ;;  %v1993_v7 = vpop.f32.mrf.mxu1 }
 0x280   : > { %v2211_v46 = vsel %vm2202_vm12, %v2040_v24, -inf  ;;  %v1994_v5 = vadd.f32 %v1993_v7, %v1945_v47 }
 0x281   : > { %v2212_v52 = vmax.f32 %v2038_v10, %v2211_v46 }
 0x283   : > { %v2213_v0 = vrot.slane %v2212_v52, 4 }
 0x285   : > { %v2214_v49 = vmax.f32 %v2212_v52, %v2213_v0  ;;  %v2042_v56 = vpop.f32.mrf.mxu2  ;;  %v1946_v44 = vpop.f32.mrf.mxu0 }
 0x286   : > { %v2043_v50 = vadd.f32 %v2042_v56, %v1994_v5  ;;  %v1947_v62 = vadd.f32 %v1946_v44, %v4325_v57  ;;  %v1995_v9 = vpop.f32.mrf.mxu1 }
 0x287   : > { %v2215_v55 = vrot.slane %v2214_v49, 2 }
 0x288   : > { %v1996_v34 = vadd.f32 %v1995_v9, %v1947_v62 }
 0x289   : > { %v2216_v14 = vmax.f32 %v2214_v49, %v2215_v55 }
 0x28b   : > { %v2217_v58 = vrot.slane %v2216_v14, 1 }
 0x28d   : > { %v2218_v39 = vmax.f32 %v2216_v14, %v2217_v58  ;;  %v2044_v45 = vpop.f32.mrf.mxu2  ;;  %v1949_v51 = vpop.f32.mrf.mxu0 }
 0x28e   : > { %v2045_v32 = vadd.f32 %v2044_v45, %v1996_v34  ;;  %v1950_v18 = vadd.f32 %v1949_v51, %v4331_v37  ;;  %v1998_v17 = vpop.f32.mrf.mxu1 }
 0x28f   : > { %v2314_v30 = vsel %vm2275_vm4, %v2218_v39, %v2210_v38  ;;  %v3472_v38 = vld [vmem:[#allocation9 + $0xb8] sm:$0xff] }
 0x290   : > { %v2219_v28 = vsel %vm2202_vm12, %v2045_v32, -inf  ;;  %v1999_v36 = vadd.f32 %v1998_v17, %v1950_v18  ;;  %2567 = vmatpush.bf16.msrb.mxu3 %v3472_v38 }
 0x291   : > { %v2220_v35 = vmax.f32 %v2043_v50, %v2219_v28 }
 0x293   : > { %v2221_v57 = vrot.slane %v2220_v35, 4 }
 0x295   : > { %v2222_v15 = vmax.f32 %v2220_v35, %v2221_v57  ;;  %v2047_v2 = vpop.f32.mrf.mxu2  ;;  %v1951_v29 = vpop.f32.mrf.mxu0 }
 0x296   : > { %v2048_v33 = vadd.f32 %v2047_v2, %v1999_v36  ;;  %v2000_v61 = vpop.f32.mrf.mxu1  ;;  %v1952_v25 = vadd.f32 %v1951_v29, %v4336_v20  ;;  %v3470_v2 = vld [vmem:[#allocation9 + $0xa8] sm:$0xff] }
 0x297   : > { %v2223_v12 = vrot.slane %v2222_v15, 2 }
 0x298   : > { %v2001_v23 = vadd.f32 %v2000_v61, %v1952_v25  ;;  %v3469_v25 = vld [vmem:[#allocation9 + $0xa0] sm:$0xff] }
 0x299   : > { %v2224_v6 = vmax.f32 %v2222_v15, %v2223_v12 }
 0x29b   : > { %v2225_v40 = vrot.slane %v2224_v6, 1 }
 0x29d   : > { %v2226_v10 = vmax.f32 %v2224_v6, %v2225_v40  ;;  %v2049_v4 = vpop.f32.mrf.mxu2  ;;  %v1954_v3 = vpop.f32.mrf.mxu0 }
 0x29e   : > { %v2050_v37 = vadd.f32 %v2049_v4, %v2001_v23  ;;  %v2003_v22 = vpop.f32.mrf.mxu1  ;;  %v1955_v53 = vadd.f32 %v1954_v3, %v4342_v59 }
 0x29f   : > { %v2315_v16 = vsel %vm2277_vm5, %v2226_v10, %v2314_v30  ;;  %v3471_v30 = vld [vmem:[#allocation9 + $0xb0] sm:$0xff]  ;;  %v3468_v10 = vld [vmem:[#allocation9 + $0x98] sm:$0xff] }
 0x2a0   : > { %v2227_v42 = vsel %vm2202_vm12, %v2050_v37, -inf  ;;  %v2004_v41 = vadd.f32 %v2003_v22, %v1955_v53  ;;  %2568 = vmatpush.bf16.msrb.mxu3 %v3471_v30 }
 0x2a1   : > { %v2228_v27 = vmax.f32 %v2048_v33, %v2227_v42  ;;  %v3467_v42 = vld [vmem:[#allocation9 + $0x90] sm:$0xff] }
 0x2a3   : > { %v2229_v60 = vrot.slane %v2228_v27, 4 }
 0x2a4   : > { %2569 = vmatpush.bf16.msrb.mxu3 %v3470_v2 }
 0x2a5   : > { %v2230_v48 = vmax.f32 %v2228_v27, %v2229_v60  ;;  %v2052_v24 = vpop.f32.mrf.mxu2  ;;  %v1956_v43 = vpop.f32.mrf.mxu0 }
 0x2a6   : > { %v2005_v7 = vpop.f32.mrf.mxu1  ;;  %v1957_v20 = vadd.f32 %v1956_v43, %v4347_v21  ;;  %v2053_v55 = vadd.f32 %v2052_v24, %v2004_v41 }
 0x2a7   : > { %v2231_v47 = vrot.slane %v2230_v48, 2 }
 0x2a8   : > { %v2006_v5 = vadd.f32 %v2005_v7, %v1957_v20  ;;  %2570 = vmatpush.bf16.msrb.mxu3 %v3469_v25 }
 0x2a9   : > { %v2232_v46 = vmax.f32 %v2230_v48, %v2231_v47  ;;  %v3466_v47 = vld [vmem:[#allocation9 + $0x88] sm:$0xff] }
 0x2ab   : > { %v2233_v52 = vrot.slane %v2232_v46, 1 }
 0x2ac   : > { %2571 = vmatpush.bf16.msrb.mxu3 %v3468_v10 }
 0x2ad   : > { %v2234_v0 = vmax.f32 %v2232_v46, %v2233_v52  ;;  %v2054_v49 = vpop.f32.mrf.mxu2  ;;  %v1959_v50 = vpop.f32.mrf.mxu0 }
 0x2ae   : > { %v2055_v56 = vadd.f32 %v2054_v49, %v2006_v5  ;;  %v2008_v62 = vpop.f32.mrf.mxu1  ;;  %v1960_v51 = vadd.f32 %v1959_v50, %v4355_v11 }
 0x2af   : > { %v2316_v44 = vsel %vm2279_vm6, %v2234_v0, %v2315_v16 }
 0x2b0   : > { %v2235_v9 = vsel %vm2202_vm12, %v2055_v56, -inf  ;;  %v2009_v35 = vadd.f32 %v2008_v62, %v1960_v51  ;;  %2572 = vmatpush.bf16.msrb.mxu3 %v3467_v42 }
 0x2b1   : > { %v2236_v26 = vmax.f32 %v2053_v55, %v2235_v9 }
 0x2b3   : > { %v2237_v14 = vrot.slane %v2236_v26, 4 }
 0x2b4   : > { %2573 = vmatpush.bf16.msrb.mxu3 %v3466_v47 }
 0x2b5   : > { %v2238_v34 = vmax.f32 %v2236_v26, %v2237_v14  ;;  %v2057_v21 = vpop.f32.mrf.mxu2  ;;  %v1961_v58 = vpop.f32.mrf.mxu0 }
 0x2b6   : > { %v2010_v39 = vpop.f32.mrf.mxu1  ;;  %v1962_v45 = vadd.f32 %v1961_v58, %v4359_v8  ;;  %v2058_v29 = vadd.f32 %v2057_v21, %v2009_v35  ;;  %v3556_v35 = vld [vmem:[%s4462_s4] ss:$0 sm:$0xff] }
 0x2b7   : > { %v2239_v59 = vrot.slane %v2238_v34, 2  ;;  %v2551_v2 = vadd.f32 %v3556_v35, %v4390_v1 }
 0x2b8   : > { %v2011_v17 = vadd.f32 %v2010_v39, %v1962_v45 }
 0x2b9   : > { %v2240_v32 = vmax.f32 %v2238_v34, %v2239_v59 }
 0x2bb   : > { %v2241_v18 = vrot.slane %v2240_v32, 1 }
 0x2bd   : > { %v2242_v28 = vmax.f32 %v2240_v32, %v2241_v18  ;;  %v2059_v36 = vpop.f32.mrf.mxu2  ;;  %v1964_v15 = vpop.f32.mrf.mxu0 }
 0x2be   : > { %v2060_v57 = vadd.f32 %v2059_v36, %v2011_v17  ;;  %v2013_v12 = vpop.f32.mrf.mxu1  ;;  %v1965_v22 = vadd.f32 %v1964_v15, %v4367_v54  ;;  %v2332_v17 = vperm.slane %v4296_v13, 2 }
 0x2bf   : > { %v2317_v33 = vsel %vm2281_vm7, %v2242_v28, %v2316_v44 }
 0x2c0   : > { %v2243_v8 = vsel %vm2202_vm12, %v2060_v57, -inf  ;;  %v2014_v24 = vadd.f32 %v2013_v12, %v1965_v22 }
 0x2c1   : > { %v2244_v61 = vmax.f32 %v2058_v29, %v2243_v8 }
 0x2c3   : > { %v2245_v11 = vrot.slane %v2244_v61, 4 }
 0x2c5   : > { %v2246_v6 = vmax.f32 %v2244_v61, %v2245_v11  ;;  %v2062_v40 = vpop.f32.mrf.mxu2  ;;  %v1966_v23 = vpop.f32.mrf.mxu0 }
 0x2c6   : > { %v2015_v37 = vpop.f32.mrf.mxu1  ;;  %v1967_v3 = vadd.f32 %v1966_v23, %v4371_v63  ;;  %v2063_v53 = vadd.f32 %v2062_v40, %v2014_v24  ;;  %v3465_v63 = vld [vmem:[#allocation9 + $0x80] sm:$0xff] }
 0x2c7   : > { %v2247_v4 = vrot.slane %v2246_v6, 2  ;;  %2574 = vmatpush.bf16.msrb.mxu3 %v3465_v63 }
 0x2c8   : > { %v2016_v60 = vadd.f32 %v2015_v37, %v1967_v3 }
 0x2c9   : > { %v2248_v16 = vmax.f32 %v2246_v6, %v2247_v4 }
 0x2cb   : > { %v2249_v27 = vrot.slane %v2248_v16, 1 }
 0x2cd   : > { %v2250_v48 = vmax.f32 %v2248_v16, %v2249_v27  ;;  %v2064_v43 = vpop.f32.mrf.mxu2  ;;  %v1969_v20 = vpop.f32.mrf.mxu0 }
 0x2ce   : > { %v2065_v7 = vadd.f32 %v2064_v43, %v2016_v60  ;;  %v2018_v0 = vpop.f32.mrf.mxu1  ;;  %v1970_v62 = vadd.f32 %v1969_v20, %v4377_v31 }
 0x2cf   : > { %v2318_v46 = vsel %vm2283_vm8, %v2250_v48, %v2317_v33 }
 0x2d0   : > { %v2251_v52 = vsel %vm2202_vm12, %v2065_v7, -inf  ;;  %v2019_v21 = vadd.f32 %v2018_v0, %v1970_v62 }
 0x2d1   : > { %v2252_v5 = vmax.f32 %v2063_v53, %v2251_v52 }
 0x2d3   : > { %v2253_v54 = vrot.slane %v2252_v5, 4 }
 0x2d5   : > { %v2254_v41 = vmax.f32 %v2252_v5, %v2253_v54  ;;  %v2067_v49 = vpop.f32.mrf.mxu2  ;;  %v1971_v56 = vpop.f32.mrf.mxu0 }
 0x2d6   : > { %v1972_v44 = vadd.f32 %v1971_v56, %v4382_v19  ;;  %v2020_v26 = vpop.f32.mrf.mxu1  ;;  %v2068_v39 = vadd.f32 %v2067_v49, %v2019_v21 }
 0x2d7   : > { %v2255_v50 = vrot.slane %v2254_v41, 2 }
 0x2d8   : > { %v2021_v14 = vadd.f32 %v2020_v26, %v1972_v44 }
 0x2d9   : > { %v2256_v55 = vmax.f32 %v2254_v41, %v2255_v50 }
 0x2db   : > { %v2257_v9 = vrot.slane %v2256_v55, 1 }
 0x2dd   : > { %v2258_v34 = vmax.f32 %v2256_v55, %v2257_v9  ;;  %v2069_v58 = vpop.f32.mrf.mxu2 }
 0x2de   : > { %v2070_v38 = vadd.f32 %v2069_v58, %v2021_v14 }
 0x2df   : > { %v2319_v59 = vsel %vm2285_vm9, %v2258_v34, %v2318_v46 }
 0x2e0   : > { %v2259_v45 = vsel %vm2202_vm12, %v2070_v38, -inf }
 0x2e1   : > { %v2260_v32 = vmax.f32 %v2068_v39, %v2259_v45 }
 0x2e3   : > { %v2261_v51 = vrot.slane %v2260_v32, 4 }
 0x2e5   : > { %v2262_v30 = vmax.f32 %v2260_v32, %v2261_v51 }
 0x2e7   : > { %v2263_v19 = vrot.slane %v2262_v30, 2 }
 0x2e9   : > { %v2264_v18 = vmax.f32 %v2262_v30, %v2263_v19 }
 0x2eb   : > { %v2265_v31 = vrot.slane %v2264_v18, 1 }
 0x2ed   : > { %v2266_v28 = vmax.f32 %v2264_v18, %v2265_v31 }
 0x2ef   : > { %v2320_v36 = vsel %vm2287_vm10, %v2266_v28, %v2319_v59 }
 0x2f0   : > { %v2338_v57 = vadd.f32 %v2332_v17, %v2320_v36 }
 0x2f2   : > { %v2341_v15 = vmax.f32 %v2338_v57, 0.0 }
 0x2f3   : > { %v2563_v33 = vpop.f32.mrf.mxu3 }
 0x2f4   : > { %v2344_v29 = vpack.c.bf16 %v2341_v15, %v2341_v15  ;;  %v2564_v12 = vadd.f32 %v2563_v33, %v2551_v2 }
 0x2f6   : > { %2575 = vmatmul.bf16.vlgmr.msrb.gmra.mxu3 %v2344_v29 }
 0x2fb   : > { %v2565_v8 = vpop.f32.mrf.mxu3 }
 0x379   : > { %v2576_v13 = vpop.f32.mrf.mxu3 }
 0x37a   : > { %v2577_v61 = vadd.f32 %v2576_v13, %v2564_v12 }
 0x37c   : > { %2580 = vst [vmem:[%s292_s8] sm:$0xff] %v2577_v61 }
 0x37d   : > { %3712 = shalt.err (!%p3709_p10)
}
 0x37e   : > { %3489 = dma.vmem_to_hbm [thread:$0]  (%p3884_p7), %s2595_s11, 128, %s2597_s13, %s2582_s14  }
 0x381   : > { %v2578_v1 = vpop.f32.mrf.mxu3 }
 0x382 PF: > { %s2608_s15 = sand.u32 1, %s3747_s18   ;;  %p4491_p12 = scmp.ge.s32.totalorder %s3759_s21, 2 }
 0x383   : > { %s2609_s29 = scalar_lea.sflag [#allocation5], %s2608_s15 }
 0x384   : > { %p3506_p13 = pnand %p4491_p12, %p3833_p6 }
 0x386   : > { %p3507_p0 = pneg %p3506_p13 }
 0x388   : > { %3742 = dma.done.wait (%p3507_p0), %s2609_s29, 128  }
 0x389   : > { %3744 = vsyncadd (%p3507_p0), %s2609_s29, 4294967168  ;;  %p20_p3 = scmp.ge.s32.totalorder %s3870_s30, 4   ;;  %s4492_s18 = smov %s3751_s19 }
 0x38a   : > { %s4493_s19 = smov %s3755_s20  ;;  %s4494_s20 = smov %s3880_s9 }
 0x38b   : > { %s4495_s21 = smov %s3870_s30  ;;  %22 = sbr.rel (!%p20_p3) target bundleno = 9 (0x9), region = 97 }
 0x390   :  { %2615 = vsyncpa [#allocation4], 1 }
 0x391   :  { %2617 = vsyncpa [#allocation4 + $0x1], 1 }
 0x392   :  { %2618 = vsyncpa [#allocation7], 1 }
 0x393   :  { %2619 = vsyncpa [#allocation10], 1 }
 0x394   :  { %2620 = vsyncpa [#allocation5], 1 }
 0x395   :  { %2622 = vsyncpa [#allocation5 + $0x1], 1 }

</bundles_post_ra>
